<compile_context>
chip_gen: v7x
topology: tpu7x:2x2x1
jax: 0.10.0
libtpu: 0.0.40
codegen_flags: <defaults>
</compile_context>

<pallas_src>
from functools import partial

import jax
import jax.numpy as jnp
from jax import lax
from jax.experimental import pallas as pl
from jax.experimental.pallas import tpu as pltpu

BASE_LR = 0.01            # MetaNet.base_lr
UPDATE_STEP_TRAIN = 10    # MetaNet.update_step_train
LANES = 128               # lane-dense metrics row width
OUT_SUBLANES = 8          # (8,128)-aligned metrics tile


# ----------------------------------------------------------------------------
# Fused kernel: batched inner-loop SGD for ALL tasks + last-task query eval.
# Inputs (built by the wrapper, all f32):
#   xl  [R, Fh] = [Xa | -ys]   (R = T*N rows, Fh = T*F + T + 1 columns)
#   xr  [R, Fh] = [Xa |  0 ]
#   wh  [1, Fh] = [w_meta x T, b_meta x T, 1]   homogeneous fast weights
#   xqT [Fh, M] = augmented, transposed query design matrix of the LAST task
#   yq  [1, M]  = last task's query targets (lane-major)
# ----------------------------------------------------------------------------
def _metanet_kernel(xl_ref, xr_ref, wh_ref, xqT_ref, yq_ref, out_ref, *, eta):
    # --- one-time precompute (off the dependent chain) ----------------------
    xl = xl_ref[...]                                   # [R, Fh]
    xr = xr_ref[...]                                   # [R, Fh]
    # G = [[A, 0], [-v, 0]]  with A = Xa^T Xa (block-diag over tasks),
    #                             v = ys^T Xa.       One MXU op.
    g = lax.dot_general(xl, xr, (((0,), (0,)), ((), ())),
                        preferred_element_type=jnp.float32)        # [Fh, Fh]
    fh = g.shape[0]
    row_i = lax.broadcasted_iota(jnp.int32, (fh, fh), 0)
    col_i = lax.broadcasted_iota(jnp.int32, (fh, fh), 1)
    eye = (row_i == col_i).astype(jnp.float32)
    # Homogeneous SGD transition matrix: wh @ m == [w(I-eta*A) + eta*v, 1]
    m = eye - eta * g

    # --- inner loop: UPDATE_STEP_TRAIN dependent [1,Fh]x[Fh,Fh] matvecs -----
    # (Serial dependence on wh; unrolling only removes loop overhead.)
    wh = wh_ref[...]                                   # [1, Fh]
    for _ in range(UPDATE_STEP_TRAIN):
        wh = lax.dot_general(wh, m, (((1,), (0,)), ((), ())),
                             preferred_element_type=jnp.float32)

    # --- query evaluation with the last task's adapted fast weights ---------
    yq_hat = lax.dot_general(wh, xqT_ref[...], (((1,), (0,)), ((), ())),
                             preferred_element_type=jnp.float32)   # [1, M]
    yq = yq_ref[...]                                   # [1, M]
    diff = yq_hat - yq
    abs_d = jnp.abs(diff)

    # TODO(synk): `Metrics` is undefined in the PyTorch source; standard
    # RMSE / MAPE / SMAPE definitions are used. Exact division (not approx
    # reciprocal) for metric parity -- it is a one-time cost.
    mse = jnp.mean(diff * diff)
    rmse = jnp.sqrt(mse)
    mape = jnp.mean(abs_d / jnp.abs(yq))
    smape = jnp.mean(2.0 * abs_d / (jnp.abs(yq) + jnp.abs(yq_hat)))

    # Lane-dense, (8,128)-aligned, unmasked store: metrics in lanes 0..3.
    lane = lax.broadcasted_iota(jnp.int32, (1, LANES), 1)
    row = jnp.where(lane == 0, mse,
          jnp.where(lane == 1, rmse,
          jnp.where(lane == 2, mape,
          jnp.where(lane == 3, smape, 0.0))))
    out_ref[...] = jnp.broadcast_to(row, (OUT_SUBLANES, LANES))


# ----------------------------------------------------------------------------
# MetaNet.forward equivalent (single fused pallas_call, jitted).
# Returns {'loss', 'rmse', 'mape', 'smape'} of the LAST task / LAST inner
# step, matching the PyTorch return dict.
# TODO(synk): the second-order Adam meta-update (autograd through the inner
# loop + meta_optim.step) is a training side-effect with no clean Pallas
# forward equivalent; omitted (returned values do not depend on it).
# ----------------------------------------------------------------------------
@jax.jit
def metanet_forward(spt_x, spt_y, qry_x, qry_y, w, b):
    spt_x = spt_x.astype(jnp.float32)
    spt_y = spt_y.astype(jnp.float32)
    qry_x = qry_x.astype(jnp.float32)
    qry_y = qry_y.astype(jnp.float32)

    T, N, F = spt_x.shape
    M = qry_x.shape[1]
    R = T * N
    Fh = T * F + T + 1                     # per-task weight blocks + biases + homog. 1
    eta = float(BASE_LR) * 2.0 / float(N)  # lr * d/dyhat mean((yhat-y)^2) scale

    # ---- wrapper-side layout plumbing (block-diagonal augmented designs) ----
    eye_t = jnp.eye(T, dtype=jnp.float32)
    # Xs_bd[t*N+i, s*F+f] = xs[t,i,f] * (s==t)
    xs_bd = (spt_x[:, :, None, :] * eye_t[:, None, :, None]).reshape(R, T * F)
    # bias one-hot: column T*F+t is 1 on task t's rows
    bias_cols = jnp.broadcast_to(eye_t[:, None, :], (T, N, T)).reshape(R, T)
    xa = jnp.concatenate([xs_bd, bias_cols], axis=1)             # [R, T*F+T]
    ys_col = spt_y.reshape(R, 1)
    xl = jnp.concatenate([xa, -ys_col], axis=1)                  # [R, Fh]
    xr = jnp.concatenate([xa, jnp.zeros_like(ys_col)], axis=1)   # [R, Fh]

    # Homogeneous fast-weight row, all tasks start from the meta weights.
    w_row = jnp.reshape(w, (1, F)).astype(jnp.float32)
    b_sc = jnp.reshape(b, (1, 1)).astype(jnp.float32)
    wh0 = jnp.concatenate([jnp.tile(w_row, (1, T)), jnp.tile(b_sc, (1, T)),
                           jnp.ones((1, 1), jnp.float32)], axis=1)  # [1, Fh]

    # Last task's query, augmented into the same coordinate system, transposed
    # so the in-kernel query matvec is lane-dense and needs no wh slicing.
    xq_last = qry_x[T - 1]                                       # [M, F]
    xq_aug = jnp.zeros((M, Fh), jnp.float32)
    xq_aug = xq_aug.at[:, (T - 1) * F:T * F].set(xq_last)
    xq_aug = xq_aug.at[:, T * F + (T - 1)].set(1.0)
    xq_t = xq_aug.T                                              # [Fh, M]
    yq_row = qry_y[T - 1].reshape(1, M)                          # [1, M]

    metrics = pl.pallas_call(
        partial(_metanet_kernel, eta=eta),
        out_shape=jax.ShapeDtypeStruct((OUT_SUBLANES, LANES), jnp.float32),
        grid_spec=pltpu.PrefetchScalarGridSpec(
            num_scalar_prefetch=0,
            grid=(1,),
            in_specs=[
                pl.BlockSpec((R, Fh), lambda i: (0, 0)),
                pl.BlockSpec((R, Fh), lambda i: (0, 0)),
                pl.BlockSpec((1, Fh), lambda i: (0, 0)),
                pl.BlockSpec((Fh, M), lambda i: (0, 0)),
                pl.BlockSpec((1, M), lambda i: (0, 0)),
            ],
            out_specs=pl.BlockSpec((OUT_SUBLANES, LANES), lambda i: (0, 0)),
        ),
        compiler_params=pltpu.CompilerParams(
            dimension_semantics=("arbitrary",)),
    )(xl, xr, wh0, xq_t, yq_row)

    return {'loss': metrics[0, 0], 'rmse': metrics[0, 1],
            'mape': metrics[0, 2], 'smape': metrics[0, 3]}


# Pure-JAX reference (elementwise math only, no MXU) for a correctness check.
def _metanet_forward_ref(spt_x, spt_y, qry_x, qry_y, w, b):
    T, N, F = spt_x.shape
    last = None
    for t in range(T):
        xs, ys = spt_x[t], spt_y[t]                  # [N,F], [N,1]
        wt = jnp.reshape(w, (F,)).astype(jnp.float32)
        bt = jnp.reshape(b, ()).astype(jnp.float32)
        for _ in range(UPDATE_STEP_TRAIN):
            y_hat = jnp.sum(xs * wt[None, :], axis=1, keepdims=True) + bt
            r = y_hat - ys
            wt = wt - BASE_LR * (2.0 / N) * jnp.sum(r * xs, axis=0)
            bt = bt - BASE_LR * (2.0 / N) * jnp.sum(r)
        xq, yq = qry_x[t], qry_y[t]
        yq_hat = jnp.sum(xq * wt[None, :], axis=1, keepdims=True) + bt
        d = yq_hat - yq
        mse = jnp.mean(d * d)
        last = jnp.stack([mse, jnp.sqrt(mse),
                          jnp.mean(jnp.abs(d) / jnp.abs(yq)),
                          jnp.mean(2.0 * jnp.abs(d) /
                                   (jnp.abs(yq) + jnp.abs(yq_hat)))])
    return last


if __name__ == "__main__":
    key = jax.random.PRNGKey(0)
    k1, k2, k3, k4, k5, k6 = jax.random.split(key, 6)

    task_num, spt_size, qry_size = 2, 8, 8
    time_size, feat_size = 8, 16
    F = time_size * feat_size                 # 128 (lane-aligned)

    # Per-task support / query sets (LSTM-branch input, pre-flattened).
    spt_x = jax.random.normal(k1, (task_num, spt_size, F), dtype=jnp.float32)
    qry_x = jax.random.normal(k2, (task_num, qry_size, F), dtype=jnp.float32)
    # Regression targets bounded away from 0 so MAPE is well defined.
    spt_y = 1.0 + jax.random.uniform(k3, (task_num, spt_size, 1), dtype=jnp.float32)
    qry_y = 1.0 + jax.random.uniform(k4, (task_num, qry_size, 1), dtype=jnp.float32)

    # Deterministic baseNet parameters (linear head, column layout like PyTorch).
    w0 = 0.05 * jax.random.normal(k5, (F, 1), dtype=jnp.float32)
    b0 = 0.05 * jax.random.normal(k6, (1, 1), dtype=jnp.float32)

    out = metanet_forward(spt_x, spt_y, qry_x, qry_y, w0, b0)
    jax.block_until_ready(out['loss'])
    jax.block_until_ready(out['smape'])

    # Numerical sanity check against the pure-JAX reference (loose tolerance:
    # Gram-form refactor + MXU f32 rounding differ slightly from elementwise).
    got = jnp.stack([out['loss'], out['rmse'], out['mape'], out['smape']])
    ref = _metanet_forward_ref(spt_x, spt_y, qry_x, qry_y, w0, b0)
    assert bool(jnp.allclose(got, ref, rtol=5e-2, atol=5e-3)), (got, ref)

    print("KERNEL_OK")
</pallas_src>

<mosaic_0001>
module attributes {stable_mosaic.version = 11 : i64} {
  func.func @_metanet_kernel(%arg0: i32, %arg1: memref<16x259xf32, #tpu.memory_space<vmem>>, %arg2: memref<16x259xf32, #tpu.memory_space<vmem>>, %arg3: memref<1x259xf32, #tpu.memory_space<vmem>>, %arg4: memref<259x8xf32, #tpu.memory_space<vmem>>, %arg5: memref<1x8xf32, #tpu.memory_space<vmem>>, %arg6: memref<8x128xf32, #tpu.memory_space<vmem>>) attributes {dimension_semantics = [#tpu.dimension_semantics<arbitrary>], iteration_bounds = array<i64: 1>, scalar_prefetch = 0 : i64, scratch_operands = 0 : i64, tpu.core_type = #tpu.core_type<tc>, window_params = [{pipeline_mode = #tpu.pipeline_mode<synchronous>, transform_indices = @transform_0, window_bounds = array<i64: 16, 259>}, {pipeline_mode = #tpu.pipeline_mode<synchronous>, transform_indices = @transform_1, window_bounds = array<i64: 16, 259>}, {pipeline_mode = #tpu.pipeline_mode<synchronous>, transform_indices = @transform_2, window_bounds = array<i64: 1, 259>}, {pipeline_mode = #tpu.pipeline_mode<synchronous>, transform_indices = @transform_3, window_bounds = array<i64: 259, 8>}, {pipeline_mode = #tpu.pipeline_mode<synchronous>, transform_indices = @transform_4, window_bounds = array<i64: 1, 8>}, {pipeline_mode = #tpu.pipeline_mode<synchronous>, transform_indices = @transform_5, window_bounds = array<i64: 8, 128>}]} {
    %c0 = arith.constant 0 : index
    %c0_0 = arith.constant 0 : index
    %0 = vector.load %arg1[%c0, %c0_0] : memref<16x259xf32, #tpu.memory_space<vmem>>, vector<16x259xf32>
    %c0_1 = arith.constant 0 : index
    %c0_2 = arith.constant 0 : index
    %1 = vector.load %arg2[%c0_1, %c0_2] : memref<16x259xf32, #tpu.memory_space<vmem>>, vector<16x259xf32>
    %cst = arith.constant dense<0.000000e+00> : vector<259x259xf32>
    %2 = tpu.matmul %0, %1, %cst {dimension_numbers = #tpu.dot_dimension_numbers<[0], [0], [1], [1], [0, 1, 1, 1], [], []>} : vector<16x259xf32>, vector<16x259xf32>, vector<259x259xf32> -> vector<259x259xf32>
    %3 = tpu.iota {dimensions = array<i32: 0>} : vector<259x259xi32>
    %4 = tpu.iota {dimensions = array<i32: 1>} : vector<259x259xi32>
    %5 = arith.cmpi eq, %3, %4 : vector<259x259xi32>
    %6 = arith.extui %5 : vector<259x259xi1> to vector<259x259xi32>
    %7 = arith.sitofp %6 : vector<259x259xi32> to vector<259x259xf32>
    %cst_3 = arith.constant 2.500000e-03 : f32
    %8 = vector.broadcast %cst_3 : f32 to vector<259x259xf32>
    %9 = arith.mulf %8, %2 : vector<259x259xf32>
    %10 = arith.subf %7, %9 : vector<259x259xf32>
    %c0_4 = arith.constant 0 : index
    %c0_5 = arith.constant 0 : index
    %11 = vector.load %arg3[%c0_4, %c0_5] : memref<1x259xf32, #tpu.memory_space<vmem>>, vector<1x259xf32>
    %cst_6 = arith.constant dense<0.000000e+00> : vector<1x259xf32>
    %12 = tpu.matmul %11, %10, %cst_6 {dimension_numbers = #tpu.dot_dimension_numbers<[1], [0], [0], [1], [0, 0, 1, 1], [], []>} : vector<1x259xf32>, vector<259x259xf32>, vector<1x259xf32> -> vector<1x259xf32>
    %cst_7 = arith.constant dense<0.000000e+00> : vector<1x259xf32>
    %13 = tpu.matmul %12, %10, %cst_7 {dimension_numbers = #tpu.dot_dimension_numbers<[1], [0], [0], [1], [0, 0, 1, 1], [], []>} : vector<1x259xf32>, vector<259x259xf32>, vector<1x259xf32> -> vector<1x259xf32>
    %cst_8 = arith.constant dense<0.000000e+00> : vector<1x259xf32>
    %14 = tpu.matmul %13, %10, %cst_8 {dimension_numbers = #tpu.dot_dimension_numbers<[1], [0], [0], [1], [0, 0, 1, 1], [], []>} : vector<1x259xf32>, vector<259x259xf32>, vector<1x259xf32> -> vector<1x259xf32>
    %cst_9 = arith.constant dense<0.000000e+00> : vector<1x259xf32>
    %15 = tpu.matmul %14, %10, %cst_9 {dimension_numbers = #tpu.dot_dimension_numbers<[1], [0], [0], [1], [0, 0, 1, 1], [], []>} : vector<1x259xf32>, vector<259x259xf32>, vector<1x259xf32> -> vector<1x259xf32>
    %cst_10 = arith.constant dense<0.000000e+00> : vector<1x259xf32>
    %16 = tpu.matmul %15, %10, %cst_10 {dimension_numbers = #tpu.dot_dimension_numbers<[1], [0], [0], [1], [0, 0, 1, 1], [], []>} : vector<1x259xf32>, vector<259x259xf32>, vector<1x259xf32> -> vector<1x259xf32>
    %cst_11 = arith.constant dense<0.000000e+00> : vector<1x259xf32>
    %17 = tpu.matmul %16, %10, %cst_11 {dimension_numbers = #tpu.dot_dimension_numbers<[1], [0], [0], [1], [0, 0, 1, 1], [], []>} : vector<1x259xf32>, vector<259x259xf32>, vector<1x259xf32> -> vector<1x259xf32>
    %cst_12 = arith.constant dense<0.000000e+00> : vector<1x259xf32>
    %18 = tpu.matmul %17, %10, %cst_12 {dimension_numbers = #tpu.dot_dimension_numbers<[1], [0], [0], [1], [0, 0, 1, 1], [], []>} : vector<1x259xf32>, vector<259x259xf32>, vector<1x259xf32> -> vector<1x259xf32>
    %cst_13 = arith.constant dense<0.000000e+00> : vector<1x259xf32>
    %19 = tpu.matmul %18, %10, %cst_13 {dimension_numbers = #tpu.dot_dimension_numbers<[1], [0], [0], [1], [0, 0, 1, 1], [], []>} : vector<1x259xf32>, vector<259x259xf32>, vector<1x259xf32> -> vector<1x259xf32>
    %cst_14 = arith.constant dense<0.000000e+00> : vector<1x259xf32>
    %20 = tpu.matmul %19, %10, %cst_14 {dimension_numbers = #tpu.dot_dimension_numbers<[1], [0], [0], [1], [0, 0, 1, 1], [], []>} : vector<1x259xf32>, vector<259x259xf32>, vector<1x259xf32> -> vector<1x259xf32>
    %cst_15 = arith.constant dense<0.000000e+00> : vector<1x259xf32>
    %21 = tpu.matmul %20, %10, %cst_15 {dimension_numbers = #tpu.dot_dimension_numbers<[1], [0], [0], [1], [0, 0, 1, 1], [], []>} : vector<1x259xf32>, vector<259x259xf32>, vector<1x259xf32> -> vector<1x259xf32>
    %c0_16 = arith.constant 0 : index
    %c0_17 = arith.constant 0 : index
    %22 = vector.load %arg4[%c0_16, %c0_17] : memref<259x8xf32, #tpu.memory_space<vmem>>, vector<259x8xf32>
    %cst_18 = arith.constant dense<0.000000e+00> : vector<1x8xf32>
    %23 = tpu.matmul %21, %22, %cst_18 {dimension_numbers = #tpu.dot_dimension_numbers<[1], [0], [0], [1], [0, 0, 1, 1], [], []>} : vector<1x259xf32>, vector<259x8xf32>, vector<1x8xf32> -> vector<1x8xf32>
    %c0_19 = arith.constant 0 : index
    %c0_20 = arith.constant 0 : index
    %24 = vector.load %arg5[%c0_19, %c0_20] : memref<1x8xf32, #tpu.memory_space<vmem>>, vector<1x8xf32>
    %25 = arith.subf %23, %24 : vector<1x8xf32>
    %26 = math.absf %25 : vector<1x8xf32>
    %27 = arith.mulf %25, %25 : vector<1x8xf32>
    %28 = vector.shape_cast %27 : vector<1x8xf32> to vector<1x1x8xf32>
    %cst_21 = arith.constant dense<0.000000e+00> : vector<1xf32>
    %29 = vector.multi_reduction <add>, %28, %cst_21 [1, 2] : vector<1x1x8xf32> to vector<1xf32>
    %30 = vector.shape_cast %29 : vector<1xf32> to vector<1x1x1xf32>
    %31 = vector.extract %30[0, 0, 0] : f32 from vector<1x1x1xf32>
    %cst_22 = arith.constant 8.000000e+00 : f32
    %32 = arith.divf %31, %cst_22 : f32
    %33 = math.sqrt %32 : f32
    %34 = math.absf %24 : vector<1x8xf32>
    %35 = arith.divf %26, %34 : vector<1x8xf32>
    %36 = vector.shape_cast %35 : vector<1x8xf32> to vector<1x1x8xf32>
    %cst_23 = arith.constant dense<0.000000e+00> : vector<1xf32>
    %37 = vector.multi_reduction <add>, %36, %cst_23 [1, 2] : vector<1x1x8xf32> to vector<1xf32>
    %38 = vector.shape_cast %37 : vector<1xf32> to vector<1x1x1xf32>
    %39 = vector.extract %38[0, 0, 0] : f32 from vector<1x1x1xf32>
    %cst_24 = arith.constant 8.000000e+00 : f32
    %40 = arith.divf %39, %cst_24 : f32
    %cst_25 = arith.constant 2.000000e+00 : f32
    %41 = vector.broadcast %cst_25 : f32 to vector<1x8xf32>
    %42 = arith.mulf %41, %26 : vector<1x8xf32>
    %43 = math.absf %24 : vector<1x8xf32>
    %44 = math.absf %23 : vector<1x8xf32>
    %45 = arith.addf %43, %44 : vector<1x8xf32>
    %46 = arith.divf %42, %45 : vector<1x8xf32>
    %47 = vector.shape_cast %46 : vector<1x8xf32> to vector<1x1x8xf32>
    %cst_26 = arith.constant dense<0.000000e+00> : vector<1xf32>
    %48 = vector.multi_reduction <add>, %47, %cst_26 [1, 2] : vector<1x1x8xf32> to vector<1xf32>
    %49 = vector.shape_cast %48 : vector<1xf32> to vector<1x1x1xf32>
    %50 = vector.extract %49[0, 0, 0] : f32 from vector<1x1x1xf32>
    %cst_27 = arith.constant 8.000000e+00 : f32
    %51 = arith.divf %50, %cst_27 : f32
    %52 = tpu.iota {dimensions = array<i32: 1>} : vector<1x128xi32>
    %c0_i32 = arith.constant 0 : i32
    %53 = vector.broadcast %c0_i32 : i32 to vector<1x128xi32>
    %54 = arith.cmpi eq, %52, %53 : vector<1x128xi32>
    %c1_i32 = arith.constant 1 : i32
    %55 = vector.broadcast %c1_i32 : i32 to vector<1x128xi32>
    %56 = arith.cmpi eq, %52, %55 : vector<1x128xi32>
    %c2_i32 = arith.constant 2 : i32
    %57 = vector.broadcast %c2_i32 : i32 to vector<1x128xi32>
    %58 = arith.cmpi eq, %52, %57 : vector<1x128xi32>
    %c3_i32 = arith.constant 3 : i32
    %59 = vector.broadcast %c3_i32 : i32 to vector<1x128xi32>
    %60 = arith.cmpi eq, %52, %59 : vector<1x128xi32>
    %cst_28 = arith.constant 0.000000e+00 : f32
    %61 = vector.broadcast %51 : f32 to vector<1x128xf32>
    %62 = vector.broadcast %cst_28 : f32 to vector<1x128xf32>
    %63 = arith.select %60, %61, %62 : vector<1x128xi1>, vector<1x128xf32>
    %64 = vector.broadcast %40 : f32 to vector<1x128xf32>
    %65 = arith.select %58, %64, %63 : vector<1x128xi1>, vector<1x128xf32>
    %66 = vector.broadcast %33 : f32 to vector<1x128xf32>
    %67 = arith.select %56, %66, %65 : vector<1x128xi1>, vector<1x128xf32>
    %68 = vector.broadcast %32 : f32 to vector<1x128xf32>
    %69 = arith.select %54, %68, %67 : vector<1x128xi1>, vector<1x128xf32>
    %70 = vector.shape_cast %69 : vector<1x128xf32> to vector<1x128xf32>
    %71 = vector.broadcast %70 : vector<1x128xf32> to vector<8x128xf32>
    %c0_29 = arith.constant 0 : index
    %c0_30 = arith.constant 0 : index
    %72 = vector.load %arg6[%c0_29, %c0_30] : memref<8x128xf32, #tpu.memory_space<vmem>>, vector<8x128xf32>
    tpu.vector_store %arg6[%c0_29, %c0_30], %71 {strides = array<i32>} : memref<8x128xf32, #tpu.memory_space<vmem>>, vector<8x128xf32>,
    return
  }
  func.func @transform_0(%arg0: i32) -> (i32, i32) {
    %c0_i32 = arith.constant 0 : i32
    %c0_i32_0 = arith.constant 0 : i32
    %c0_i32_1 = arith.constant 0 : i32
    return %c0_i32, %c0_i32_0 : i32, i32
  }
  func.func @transform_1(%arg0: i32) -> (i32, i32) {
    %c0_i32 = arith.constant 0 : i32
    %c0_i32_0 = arith.constant 0 : i32
    %c0_i32_1 = arith.constant 0 : i32
    return %c0_i32, %c0_i32_0 : i32, i32
  }
  func.func @transform_2(%arg0: i32) -> (i32, i32) {
    %c0_i32 = arith.constant 0 : i32
    %c0_i32_0 = arith.constant 0 : i32
    %c0_i32_1 = arith.constant 0 : i32
    return %c0_i32, %c0_i32_0 : i32, i32
  }
  func.func @transform_3(%arg0: i32) -> (i32, i32) {
    %c0_i32 = arith.constant 0 : i32
    %c0_i32_0 = arith.constant 0 : i32
    %c0_i32_1 = arith.constant 0 : i32
    return %c0_i32, %c0_i32_0 : i32, i32
  }
  func.func @transform_4(%arg0: i32) -> (i32, i32) {
    %c0_i32 = arith.constant 0 : i32
    %c0_i32_0 = arith.constant 0 : i32
    %c0_i32_1 = arith.constant 0 : i32
    return %c0_i32, %c0_i32_0 : i32, i32
  }
  func.func @transform_5(%arg0: i32) -> (i32, i32) {
    %c0_i32 = arith.constant 0 : i32
    %c0_i32_0 = arith.constant 0 : i32
    %c0_i32_1 = arith.constant 0 : i32
    return %c0_i32, %c0_i32_0 : i32, i32
  }
}

</mosaic_0001>

<bundles_post_ra>
// kernel: metanet_forward.1
= control target key start
LH: loop header
LB: loop body
LE: loop exit
PB: predicated region body
PF: predicated region fallthrough
CT: control target
= control target key end

     0   :  { %v6175_v3 = vmov 0.0|0.0   ;;  %v7348_v4 = vmov 0.0   ;;  %vm6177_vm0 = vmmov 0   ;;  %vm128_vm1 = vcmask 130048   ;;  %s7342_s0 = inlined_call_operand.vmem [shape: f32[16,259], index: 0, kind: input, shape index: {}]   ;;  %s7343_s1 = inlined_call_operand.vmem [shape: f32[16,259], index: 1, kind: input, shape index: {}]   ;;  %s7344_s2 = inlined_call_operand.vmem [shape: f32[1,259], index: 2, kind: input, shape index: {}]   ;;  %s7345_s3 = inlined_call_operand.vmem [shape: f32[259,8], index: 3, kind: input, shape index: {}]   ;;  %s7346_s4 = inlined_call_operand.vmem [shape: f32[1,8], index: 4, kind: input, shape index: {}]   ;;  %s7347_s5 = inlined_call_operand.vmem [shape: f32[8,128], index: 5, kind: output, shape index: {}]  }
   0x1   :  { %v20_v0 = vld [vmem:[%s7342_s0] sm:$0xff]  ;;  %v23_v1 = vld [vmem:[%s7342_s0 + $0x18] sm:$0xff]  ;;  %v21_v2 = vld [vmem:[%s7342_s0 + $0x8] sm:$0xff]  ;;  %5142 = vmatprep.subr.bf16.mxu1 %v6175_v3  ;;  %292 = vmatprep.mubr.f32.mxu0 %v7348_v4  ;;  %v721_v50 = vlaneseq }
   0x2   :  { %32 = vxpose.xlu0.b32.start [1/2] (short) %v20_v0, 128  ;;  %64 = vxpose.xlu1.b32.start [1/2] (short) %v21_v2, 128  ;;  %v24_v5 = vld [vmem:[%s7342_s0 + $0x20] sm:$0xff]  ;;  %v27_v6 = vld [vmem:[%s7343_s1 + $0x8] sm:$0xff]  ;;  %v29_v10 = vld [vmem:[%s7343_s1 + $0x18] sm:$0xff] }
   0x3   :  { %v30_v7 = vld [vmem:[%s7343_s1 + $0x20] sm:$0xff]  ;;  %v28_v11 = vld [vmem:[%s7343_s1 + $0x10] sm:$0xff]  ;;  %4984 = vmatprep.mubr.msk.f32.mxu1 %vm6177_vm0, %v7348_v4  ;;  %v31_v13 = vld [vmem:[%s7343_s1 + $0x28] sm:$0xff]  ;;  %v6409_v51 = vshrl.u32 %v721_v50, 7  ;;  %v6411_v52 = vand.u32 127, %v721_v50 }
   0x4   :  { %v5138_v8 = vpack.c.bf16 %v30_v7, %v27_v6  ;;  %v26_v9 = vld [vmem:[%s7343_s1] sm:$0xff]  ;;  %v5143_v14 = vpack.c.bf16 %v31_v13, %v28_v11  ;;  %v22_v15 = vld [vmem:[%s7342_s0 + $0x10] sm:$0xff]  ;;  %v25_v16 = vld [vmem:[%s7342_s0 + $0x28] sm:$0xff] }
   0x5   :  { %v5140_v12 = vpack.c.bf16 %v29_v10, %v26_v9  ;;  %7368 = vst [vmem:[#allocation2_spill] sm:$0xff] %v6411_v52  ;;  %v723_v53 = vadd.s32 8, %v6409_v51  ;;  %vm759_vm2 = vcmp.eq.s32.totalorder %v6409_v51, %v6411_v52  ;;  %v1262_v60 = vsub.s32 1, %v6409_v51  ;;  %v1254_v63 = vld [vmem:[%s7344_s2] sm:$0x7] }
   0x6   :  { %5139 = vmatprep.subr.bf16.mxu0 %v5138_v8  ;;  %33 = vxpose.xlu0.b32.end [2/2] (short) %v23_v1, 128  ;;  %v4453_v58 = vsel %vm759_vm2, 1.0, %v7348_v4  ;;  %v724_v3 = vadd.s32 16, %v6409_v51 }
   0x7   :  { %65 = vxpose.xlu1.b32.end [2/2] (short) %v24_v5, 128  ;;  %5141 = vmatpush1.bf16.msra.mxu0 %v5140_v12  ;;  %vm762_vm3 = vcmp.eq.s32.totalorder %v723_v53, %v6411_v52  ;;  %v725_v5 = vadd.s32 24, %v6409_v51  ;;  %v1263_v6 = vrot.slane %v1254_v63, %v1262_v60 }
   0x8   :  { %5144 = vmatpush3.bf16.msra.mxu1 %v5143_v14  ;;  %v4454_v59 = vsel %vm762_vm3, 1.0, %v7348_v4  ;;  %vm765_vm4 = vcmp.eq.s32.totalorder %v724_v3, %v6411_v52 }
   0x9   :  { %vm768_vm5 = vcmp.eq.s32.totalorder %v725_v5, %v6411_v52 }
  0x3f   :  { %96 = vxpose.xlu0.b32.start [1/2] (short) (narrow) %v22_v15, 8 }
  0x43   :  { %97 = vxpose.xlu0.b32.end [2/2] (short) (narrow) %v25_v16, 8 }
  0x82   :  { %v48_v17 = vpop.trf.xlu0 }
  0x83   :  { %4387 = vmatmul.mubr.msk.f32.vlgmr.msra.gmra.mrb[0].mxu0 %vm128_vm1, %v48_v17  ;;  %4985 = vmatmul.mubr.msk.f32.vlgmr.msra.gmra.mrb[0].mxu1 %vm128_vm1, %v48_v17  ;;  %v80_v26 = vpop.trf.xlu1 }
  0x84   :  { %298 = vmatprep.mubr.f32.mxu0 %v7348_v4  ;;  %4987 = vmatprep.mubr.msk.f32.mxu1 %vm6177_vm0, %v7348_v4 }
  0x86   :  { %v49_v18 = vpop.trf.xlu0 }
  0x87   :  { %4388 = vmatmul.mubr.msk.f32.gmra.mrb[2].mxu0 %vm128_vm1, %v49_v18  ;;  %4988 = vmatmul.mubr.msk.f32.gmra.mrb[2].mxu1 %vm128_vm1, %v49_v18  ;;  %v81_v28 = vpop.trf.xlu1 }
  0x88   :  { %304 = vmatprep.mubr.f32.mxu0 %v7348_v4  ;;  %4990 = vmatprep.mubr.msk.f32.mxu1 %vm6177_vm0, %v7348_v4 }
  0x8a   :  { %v50_v19 = vpop.trf.xlu0 }
  0x8b   :  { %4389 = vmatmul.mubr.msk.f32.gmra.mrb[4].mxu0 %vm128_vm1, %v50_v19  ;;  %4991 = vmatmul.mubr.msk.f32.gmra.mrb[4].mxu1 %vm128_vm1, %v50_v19  ;;  %v82_v31 = vpop.trf.xlu1 }
  0x8c   :  { %310 = vmatprep.mubr.f32.mxu0 %v7348_v4  ;;  %4993 = vmatprep.mubr.msk.f32.mxu1 %vm6177_vm0, %v7348_v4 }
  0x8e   :  { %v51_v20 = vpop.trf.xlu0 }
  0x8f   :  { %4390 = vmatmul.mubr.msk.f32.gmra.mrb[6].mxu0 %vm128_vm1, %v51_v20  ;;  %4994 = vmatmul.mubr.msk.f32.gmra.mrb[6].mxu1 %vm128_vm1, %v51_v20  ;;  %v83_v33 = vpop.trf.xlu1 }
  0x90   :  { %316 = vmatprep.mubr.f32.mxu0 %v7348_v4  ;;  %4996 = vmatprep.mubr.msk.f32.mxu1 %vm6177_vm0, %v7348_v4 }
  0x92   :  { %v52_v21 = vpop.trf.xlu0 }
  0x93   :  { %4391 = vmatmul.mubr.msk.f32.gmra.mrb[8].mxu0 %vm128_vm1, %v52_v21  ;;  %4997 = vmatmul.mubr.msk.f32.gmra.mrb[8].mxu1 %vm128_vm1, %v52_v21  ;;  %v84_v36 = vpop.trf.xlu1 }
  0x94   :  { %322 = vmatprep.mubr.f32.mxu0 %v7348_v4  ;;  %4999 = vmatprep.mubr.msk.f32.mxu1 %vm6177_vm0, %v7348_v4 }
  0x96   :  { %v53_v22 = vpop.trf.xlu0 }
  0x97   :  { %4392 = vmatmul.mubr.msk.f32.gmra.mrb[10].mxu0 %vm128_vm1, %v53_v22  ;;  %5000 = vmatmul.mubr.msk.f32.gmra.mrb[10].mxu1 %vm128_vm1, %v53_v22  ;;  %v85_v38 = vpop.trf.xlu1 }
  0x98   :  { %328 = vmatprep.mubr.f32.mxu0 %v7348_v4  ;;  %5002 = vmatprep.mubr.msk.f32.mxu1 %vm6177_vm0, %v7348_v4 }
  0x9a   :  { %v54_v23 = vpop.trf.xlu0 }
  0x9b   :  { %4393 = vmatmul.mubr.msk.f32.gmra.mrb[12].mxu0 %vm128_vm1, %v54_v23  ;;  %5003 = vmatmul.mubr.msk.f32.gmra.mrb[12].mxu1 %vm128_vm1, %v54_v23  ;;  %v86_v39 = vpop.trf.xlu1 }
  0x9c   :  { %334 = vmatprep.mubr.f32.mxu0 %v7348_v4  ;;  %5005 = vmatprep.mubr.msk.f32.mxu1 %vm6177_vm0, %v7348_v4 }
  0x9e   :  { %v55_v24 = vpop.trf.xlu0 }
  0x9f   :  { %4394 = vmatmul.mubr.msk.f32.gmra.mrb[14].mxu0 %vm128_vm1, %v55_v24  ;;  %5006 = vmatmul.mubr.msk.f32.gmra.mrb[14].mxu1 %vm128_vm1, %v55_v24  ;;  %v87_v40 = vpop.trf.xlu1 }
  0xa0   :  { %340 = vmatprep.mubr.f32.mxu0 %v7348_v4  ;;  %5008 = vmatprep.mubr.msk.f32.mxu1 %vm6177_vm0, %v7348_v4 }
  0xa2   :  { %v56_v25 = vpop.trf.xlu0 }
  0xa3   :  { %4395 = vmatmul.mubr.msk.f32.gmra.mrb[16].mxu0 %vm128_vm1, %v56_v25  ;;  %5009 = vmatmul.mubr.msk.f32.gmra.mrb[16].mxu1 %vm128_vm1, %v56_v25  ;;  %v88_v41 = vpop.trf.xlu1  ;;  %v4455_v25 = vsel %vm765_vm4, 1.0, %v7348_v4 }
  0xa4   :  { %346 = vmatprep.mubr.f32.mxu0 %v7348_v4  ;;  %5011 = vmatprep.mubr.msk.f32.mxu1 %vm6177_vm0, %v7348_v4 }
  0xa6   :  { %v57_v27 = vpop.trf.xlu0 }
  0xa7   :  { %4396 = vmatmul.mubr.msk.f32.gmra.mrb[18].mxu0 %vm128_vm1, %v57_v27  ;;  %5012 = vmatmul.mubr.msk.f32.gmra.mrb[18].mxu1 %vm128_vm1, %v57_v27  ;;  %v89_v42 = vpop.trf.xlu1 }
  0xa8   :  { %352 = vmatprep.mubr.f32.mxu0 %v7348_v4  ;;  %5014 = vmatprep.mubr.msk.f32.mxu1 %vm6177_vm0, %v7348_v4 }
  0xaa   :  { %v58_v29 = vpop.trf.xlu0 }
  0xab   :  { %4397 = vmatmul.mubr.msk.f32.gmra.mrb[20].mxu0 %vm128_vm1, %v58_v29  ;;  %5015 = vmatmul.mubr.msk.f32.gmra.mrb[20].mxu1 %vm128_vm1, %v58_v29  ;;  %v90_v43 = vpop.trf.xlu1 }
  0xac   :  { %358 = vmatprep.mubr.f32.mxu0 %v7348_v4  ;;  %5017 = vmatprep.mubr.msk.f32.mxu1 %vm6177_vm0, %v7348_v4 }
  0xae   :  { %v59_v30 = vpop.trf.xlu0 }
  0xaf   :  { %4398 = vmatmul.mubr.msk.f32.gmra.mrb[22].mxu0 %vm128_vm1, %v59_v30  ;;  %5018 = vmatmul.mubr.msk.f32.gmra.mrb[22].mxu1 %vm128_vm1, %v59_v30  ;;  %v91_v44 = vpop.trf.xlu1 }
  0xb0   :  { %364 = vmatprep.mubr.f32.mxu0 %v7348_v4  ;;  %5020 = vmatprep.mubr.msk.f32.mxu1 %vm6177_vm0, %v7348_v4 }
  0xb2   :  { %v60_v32 = vpop.trf.xlu0 }
  0xb3   :  { %4399 = vmatmul.mubr.msk.f32.gmra.mrb[24].mxu0 %vm128_vm1, %v60_v32  ;;  %5021 = vmatmul.mubr.msk.f32.gmra.mrb[24].mxu1 %vm128_vm1, %v60_v32  ;;  %v92_v45 = vpop.trf.xlu1  ;;  %v726_v32 = vadd.s32 32, %v6409_v51 }
  0xb4   :  { %370 = vmatprep.mubr.f32.mxu0 %v7348_v4  ;;  %5023 = vmatprep.mubr.msk.f32.mxu1 %vm6177_vm0, %v7348_v4 }
  0xb5   :  { %vm771_vm6 = vcmp.eq.s32.totalorder %v726_v32, %v6411_v52 }
  0xb6   :  { %v61_v34 = vpop.trf.xlu0 }
  0xb7   :  { %4400 = vmatmul.mubr.msk.f32.gmra.mrb[26].mxu0 %vm128_vm1, %v61_v34  ;;  %5024 = vmatmul.mubr.msk.f32.gmra.mrb[26].mxu1 %vm128_vm1, %v61_v34  ;;  %v93_v46 = vpop.trf.xlu1 }
  0xb8   :  { %376 = vmatprep.mubr.f32.mxu0 %v7348_v4  ;;  %5026 = vmatprep.mubr.msk.f32.mxu1 %vm6177_vm0, %v7348_v4 }
  0xba   :  { %v62_v35 = vpop.trf.xlu0 }
  0xbb   :  { %4401 = vmatmul.mubr.msk.f32.gmra.mrb[28].mxu0 %vm128_vm1, %v62_v35  ;;  %5027 = vmatmul.mubr.msk.f32.gmra.mrb[28].mxu1 %vm128_vm1, %v62_v35  ;;  %v94_v47 = vpop.trf.xlu1 }
  0xbc   :  { %382 = vmatprep.mubr.f32.mxu0 %v7348_v4  ;;  %5029 = vmatprep.mubr.msk.f32.mxu1 %vm6177_vm0, %v7348_v4 }
  0xbe   :  { %v63_v37 = vpop.trf.xlu0 }
  0xbf   :  { %4402 = vmatmul.mubr.msk.f32.gmra.mrb[30].mxu0 %vm128_vm1, %v63_v37  ;;  %5030 = vmatmul.mubr.msk.f32.gmra.mrb[30].mxu1 %vm128_vm1, %v63_v37  ;;  %v95_v48 = vpop.trf.xlu1 }
  0xc0   :  { %388 = vmatprep.mubr.f32.mxu0 %v7348_v4  ;;  %5032 = vmatprep.mubr.msk.f32.mxu1 %vm6177_vm0, %v7348_v4 }
  0xc2   :  { %v112_v49 = vpop.trf.xlu0 }
  0xc3   :  { %4403 = vmatmul.mubr.msk.f32.gmra.mrb[32].mxu0 %vm128_vm1, %v80_v26  ;;  %5033 = vmatmul.mubr.msk.f32.gmra.mrb[32].mxu1 %vm128_vm1, %v80_v26 }
  0xc4   :  { %394 = vmatprep.mubr.f32.mxu0 %v7348_v4  ;;  %5035 = vmatprep.mubr.msk.f32.mxu1 %vm6177_vm0, %v7348_v4 }
  0xc7   :  { %4404 = vmatmul.mubr.msk.f32.gmra.mrb[34].mxu0 %vm128_vm1, %v81_v28  ;;  %5036 = vmatmul.mubr.msk.f32.gmra.mrb[34].mxu1 %vm128_vm1, %v81_v28  ;;  %v4456_v28 = vsel %vm768_vm5, 1.0, %v7348_v4 }
  0xc8   :  { %400 = vmatprep.mubr.f32.mxu0 %v7348_v4  ;;  %5038 = vmatprep.mubr.msk.f32.mxu1 %vm6177_vm0, %v7348_v4 }
  0xcb   :  { %4405 = vmatmul.mubr.msk.f32.gmra.mrb[36].mxu0 %vm128_vm1, %v82_v31  ;;  %5039 = vmatmul.mubr.msk.f32.gmra.mrb[36].mxu1 %vm128_vm1, %v82_v31 }
  0xcc   :  { %406 = vmatprep.mubr.f32.mxu0 %v7348_v4  ;;  %5041 = vmatprep.mubr.msk.f32.mxu1 %vm6177_vm0, %v7348_v4 }
  0xcf   :  { %4406 = vmatmul.mubr.msk.f32.gmra.mrb[38].mxu0 %vm128_vm1, %v83_v33  ;;  %5042 = vmatmul.mubr.msk.f32.gmra.mrb[38].mxu1 %vm128_vm1, %v83_v33  ;;  %v727_v33 = vadd.s32 40, %v6409_v51 }
  0xd0   :  { %412 = vmatprep.mubr.f32.mxu0 %v7348_v4  ;;  %5044 = vmatprep.mubr.msk.f32.mxu1 %vm6177_vm0, %v7348_v4 }
  0xd1   :  { %vm774_vm7 = vcmp.eq.s32.totalorder %v727_v33, %v6411_v52 }
  0xd3   :  { %4407 = vmatmul.mubr.msk.f32.gmra.mrb[40].mxu0 %vm128_vm1, %v84_v36  ;;  %5045 = vmatmul.mubr.msk.f32.gmra.mrb[40].mxu1 %vm128_vm1, %v84_v36 }
  0xd4   :  { %418 = vmatprep.mubr.f32.mxu0 %v7348_v4  ;;  %5047 = vmatprep.mubr.msk.f32.mxu1 %vm6177_vm0, %v7348_v4 }
  0xd7   :  { %4408 = vmatmul.mubr.msk.f32.gmra.mrb[42].mxu0 %vm128_vm1, %v85_v38  ;;  %5048 = vmatmul.mubr.msk.f32.gmra.mrb[42].mxu1 %vm128_vm1, %v85_v38 }
  0xd8   :  { %424 = vmatprep.mubr.f32.mxu0 %v7348_v4  ;;  %5050 = vmatprep.mubr.msk.f32.mxu1 %vm6177_vm0, %v7348_v4 }
  0xdb   :  { %4409 = vmatmul.mubr.msk.f32.gmra.mrb[44].mxu0 %vm128_vm1, %v86_v39  ;;  %5051 = vmatmul.mubr.msk.f32.gmra.mrb[44].mxu1 %vm128_vm1, %v86_v39 }
  0xdc   :  { %430 = vmatprep.mubr.f32.mxu0 %v7348_v4  ;;  %5053 = vmatprep.mubr.msk.f32.mxu1 %vm6177_vm0, %v7348_v4 }
  0xdf   :  { %4410 = vmatmul.mubr.msk.f32.gmra.mrb[46].mxu0 %vm128_vm1, %v87_v40  ;;  %5054 = vmatmul.mubr.msk.f32.gmra.mrb[46].mxu1 %vm128_vm1, %v87_v40 }
  0xe0   :  { %436 = vmatprep.mubr.f32.mxu0 %v7348_v4  ;;  %5056 = vmatprep.mubr.msk.f32.mxu1 %vm6177_vm0, %v7348_v4 }
  0xe3   :  { %4411 = vmatmul.mubr.msk.f32.gmra.mrb[48].mxu0 %vm128_vm1, %v88_v41  ;;  %5057 = vmatmul.mubr.msk.f32.gmra.mrb[48].mxu1 %vm128_vm1, %v88_v41 }
  0xe4   :  { %442 = vmatprep.mubr.f32.mxu0 %v7348_v4  ;;  %5059 = vmatprep.mubr.msk.f32.mxu1 %vm6177_vm0, %v7348_v4 }
  0xe7   :  { %4412 = vmatmul.mubr.msk.f32.gmra.mrb[50].mxu0 %vm128_vm1, %v89_v42  ;;  %5060 = vmatmul.mubr.msk.f32.gmra.mrb[50].mxu1 %vm128_vm1, %v89_v42 }
  0xe8   :  { %448 = vmatprep.mubr.f32.mxu0 %v7348_v4  ;;  %5062 = vmatprep.mubr.msk.f32.mxu1 %vm6177_vm0, %v7348_v4 }
  0xeb   :  { %4413 = vmatmul.mubr.msk.f32.gmra.mrb[52].mxu0 %vm128_vm1, %v90_v43  ;;  %5063 = vmatmul.mubr.msk.f32.gmra.mrb[52].mxu1 %vm128_vm1, %v90_v43 }
  0xec   :  { %454 = vmatprep.mubr.f32.mxu0 %v7348_v4  ;;  %5065 = vmatprep.mubr.msk.f32.mxu1 %vm6177_vm0, %v7348_v4 }
  0xef   :  { %4414 = vmatmul.mubr.msk.f32.gmra.mrb[54].mxu0 %vm128_vm1, %v91_v44  ;;  %5066 = vmatmul.mubr.msk.f32.gmra.mrb[54].mxu1 %vm128_vm1, %v91_v44 }
  0xf0   :  { %460 = vmatprep.mubr.f32.mxu0 %v7348_v4  ;;  %5068 = vmatprep.mubr.msk.f32.mxu1 %vm6177_vm0, %v7348_v4 }
  0xf3   :  { %4415 = vmatmul.mubr.msk.f32.gmra.mrb[56].mxu0 %vm128_vm1, %v92_v45  ;;  %5069 = vmatmul.mubr.msk.f32.gmra.mrb[56].mxu1 %vm128_vm1, %v92_v45 }
  0xf4   :  { %466 = vmatprep.mubr.f32.mxu0 %v7348_v4  ;;  %5071 = vmatprep.mubr.msk.f32.mxu1 %vm6177_vm0, %v7348_v4 }
  0xf7   :  { %4416 = vmatmul.mubr.msk.f32.gmra.mrb[58].mxu0 %vm128_vm1, %v93_v46  ;;  %5072 = vmatmul.mubr.msk.f32.gmra.mrb[58].mxu1 %vm128_vm1, %v93_v46 }
  0xf8   :  { %472 = vmatprep.mubr.f32.mxu0 %v7348_v4  ;;  %5074 = vmatprep.mubr.msk.f32.mxu1 %vm6177_vm0, %v7348_v4 }
  0xfb   :  { %4417 = vmatmul.mubr.msk.f32.gmra.mrb[60].mxu0 %vm128_vm1, %v94_v47  ;;  %5075 = vmatmul.mubr.msk.f32.gmra.mrb[60].mxu1 %vm128_vm1, %v94_v47 }
  0xfc   :  { %478 = vmatprep.mubr.f32.mxu0 %v7348_v4  ;;  %5077 = vmatprep.mubr.msk.f32.mxu1 %vm6177_vm0, %v7348_v4 }
  0xff   :  { %4418 = vmatmul.mubr.msk.f32.gmra.mrb[62].mxu0 %vm128_vm1, %v95_v48  ;;  %5078 = vmatmul.mubr.msk.f32.gmra.mrb[62].mxu1 %vm128_vm1, %v95_v48 }
 0x100   :  { %484 = vmatprep.mubr.f32.mxu0 %v7348_v4  ;;  %5080 = vmatprep.mubr.msk.f32.mxu1 %vm6177_vm0, %v7348_v4 }
 0x103   :  { %4419 = vmatmul.mubr.msk.f32.gmra.mrb[64].mxu0 %vm128_vm1, %v112_v49  ;;  %5081 = vmatmul.mubr.msk.f32.gmra.mrb[64].mxu1 %vm128_vm1, %v112_v49 }
 0x104   :  { %1489 = vmatprep.mubr.f32.mxu1 %v1263_v6  ;;  %1347 = vmatprep.mubr.f32.mxu0 %v1263_v6 }
 0x156   :  { %v294_v54 = vpop.f32.mrb[0].mxu0  ;;  %v557_v55 = vpop.f32.mrb[0].mxu1 }
 0x157   :  { %v296_v56 = vpop.f32.mrb[1].mxu0  ;;  %v4986_v57 = vpop.f32.mrb[1].mxu1  ;;  %v1056_v61 = vmul.f32 0.0025, %v294_v54  ;;  %v1058_v62 = vmul.f32 0.0025, %v557_v55 }
 0x158   :  { %v1057_v0 = vmul.f32 0.0025, %v296_v56  ;;  %v4457_v54 = vsel %vm771_vm6, 1.0, %v7348_v4  ;;  %v4458_v57 = vsel %vm774_vm7, 1.0, %v7348_v4 }
 0x159   :  { %v1155_v12 = vsub.f32 %v4453_v58, %v1056_v61  ;;  %v1157_v13 = vsub.f32 0.0, %v1058_v62  ;;  %v728_v61 = vadd.s32 48, %v6409_v51  ;;  %v729_v62 = vadd.s32 56, %v6409_v51 }
 0x15a   :  { %v300_v1 = vpop.f32.mrb[2].mxu0  ;;  %v562_v2 = vpop.f32.mrb[2].mxu1  ;;  %v1156_v16 = vsub.f32 0.0, %v1057_v0 }
 0x15b   :  { %v1059_v7 = vmul.f32 0.0025, %v300_v1  ;;  %v1061_v8 = vmul.f32 0.0025, %v562_v2  ;;  %v302_v9 = vpop.f32.mrb[3].mxu0  ;;  %v4989_v10 = vpop.f32.mrb[3].mxu1  ;;  %vm777_vm8 = vcmp.eq.s32.totalorder %v728_v61, %v6411_v52  ;;  %vm780_vm9 = vcmp.eq.s32.totalorder %v729_v62, %v6411_v52 }
 0x15c   :  { %v1060_v11 = vmul.f32 0.0025, %v302_v9  ;;  %v733_v61 = vadd.s32 88, %v6409_v51 }
 0x15d   :  { %v1158_v14 = vsub.f32 %v4454_v59, %v1059_v7  ;;  %v1160_v15 = vsub.f32 0.0, %v1061_v8 }
 0x15e   :  { %v1159_v17 = vsub.f32 0.0, %v1060_v11  ;;  %v306_v18 = vpop.f32.mrb[4].mxu0  ;;  %v567_v19 = vpop.f32.mrb[4].mxu1  ;;  %vm792_vm13 = vcmp.eq.s32.totalorder %v733_v61, %v6411_v52 }
 0x15f   :  { %v6427_v20 = vpack.c.bf16 %v1158_v14, %v1155_v12  ;;  %v6429_v21 = vpack.c.bf16 %v1160_v15, %v1157_v13  ;;  %v308_v22 = vpop.f32.mrb[5].mxu0  ;;  %v4992_v23 = vpop.f32.mrb[5].mxu1  ;;  %v1062_v26 = vmul.f32 0.0025, %v306_v18  ;;  %v1064_v27 = vmul.f32 0.0025, %v567_v19 }
 0x160   :  { %v6431_v24 = vpack.c.bf16 %v1159_v17, %v1156_v16  ;;  %v1063_v29 = vmul.f32 0.0025, %v308_v22  ;;  %v4459_v18 = vsel %vm777_vm8, 1.0, %v7348_v4  ;;  %v4460_v23 = vsel %vm780_vm9, 1.0, %v7348_v4 }
 0x161   :  { %v1161_v39 = vsub.f32 %v4455_v25, %v1062_v26  ;;  %v1163_v40 = vsub.f32 0.0, %v1064_v27 }
 0x162   :  { %v312_v30 = vpop.f32.mrb[6].mxu0  ;;  %v572_v31 = vpop.f32.mrb[6].mxu1  ;;  %5146 = vmatprep.subr.bf16.mxu0 %v6431_v24  ;;  %v1162_v43 = vsub.f32 0.0, %v1063_v29  ;;  %v731_v29 = vadd.s32 72, %v6409_v51 }
 0x163   :  { %v1065_v34 = vmul.f32 0.0025, %v312_v30  ;;  %v1067_v35 = vmul.f32 0.0025, %v572_v31  ;;  %v314_v36 = vpop.f32.mrb[7].mxu0  ;;  %v4995_v37 = vpop.f32.mrb[7].mxu1  ;;  %5148 = vmatpush1.bf16.msra.mxu0 %v6427_v20 }
 0x164   :  { %v1066_v38 = vmul.f32 0.0025, %v314_v36  ;;  %vm786_vm11 = vcmp.eq.s32.totalorder %v731_v29, %v6411_v52 }
 0x165   :  { %v1164_v41 = vsub.f32 %v4456_v28, %v1065_v34  ;;  %v1166_v42 = vsub.f32 0.0, %v1067_v35  ;;  %v730_v28 = vadd.s32 64, %v6409_v51 }
 0x166   :  { %v1165_v44 = vsub.f32 0.0, %v1066_v38  ;;  %v318_v45 = vpop.f32.mrb[8].mxu0  ;;  %v577_v46 = vpop.f32.mrb[8].mxu1 }
 0x167   :  { %v6441_v47 = vpack.c.bf16 %v1164_v41, %v1161_v39  ;;  %v6443_v48 = vpack.c.bf16 %v1166_v42, %v1163_v40  ;;  %v320_v49 = vpop.f32.mrb[9].mxu0  ;;  %v4998_v50 = vpop.f32.mrb[9].mxu1  ;;  %v1068_v55 = vmul.f32 0.0025, %v318_v45  ;;  %v1070_v56 = vmul.f32 0.0025, %v577_v46 }
 0x168   :  { %v6445_v53 = vpack.c.bf16 %v1165_v44, %v1162_v43  ;;  %v1069_v58 = vmul.f32 0.0025, %v320_v49  ;;  %vm783_vm10 = vcmp.eq.s32.totalorder %v730_v28, %v6411_v52 }
 0x169   :  { %v1167_v5 = vsub.f32 %v4457_v54, %v1068_v55  ;;  %v1169_v6 = vsub.f32 0.0, %v1070_v56  ;;  %v4461_v50 = vsel %vm783_vm10, 1.0, %v7348_v4  ;;  %v4462_v56 = vsel %vm786_vm11, 1.0, %v7348_v4 }
 0x16a   :  { %v324_v59 = vpop.f32.mrb[10].mxu0  ;;  %v582_v60 = vpop.f32.mrb[10].mxu1  ;;  %5150 = vmatprep.subr.bf16.mxu0 %v6445_v53  ;;  %v1168_v9 = vsub.f32 0.0, %v1069_v58 }
 0x16b   :  { %v1071_v63 = vmul.f32 0.0025, %v324_v59  ;;  %v1073_v0 = vmul.f32 0.0025, %v582_v60  ;;  %v326_v1 = vpop.f32.mrb[11].mxu0  ;;  %v5001_v2 = vpop.f32.mrb[11].mxu1  ;;  %5152 = vmatpush1.bf16.msra.mxu0 %v6441_v47 }
 0x16c   :  { %v1072_v3 = vmul.f32 0.0025, %v326_v1  ;;  %v732_v60 = vadd.s32 80, %v6409_v51 }
 0x16d   :  { %v1170_v7 = vsub.f32 %v4458_v57, %v1071_v63  ;;  %v1172_v8 = vsub.f32 0.0, %v1073_v0 }
 0x16e   :  { %v1171_v10 = vsub.f32 0.0, %v1072_v3  ;;  %v330_v11 = vpop.f32.mrb[12].mxu0  ;;  %v587_v12 = vpop.f32.mrb[12].mxu1  ;;  %vm789_vm12 = vcmp.eq.s32.totalorder %v732_v60, %v6411_v52 }
 0x16f   :  { %v6455_v13 = vpack.c.bf16 %v1170_v7, %v1167_v5  ;;  %v6457_v14 = vpack.c.bf16 %v1172_v8, %v1169_v6  ;;  %v332_v15 = vpop.f32.mrb[13].mxu0  ;;  %v5004_v16 = vpop.f32.mrb[13].mxu1  ;;  %v1074_v19 = vmul.f32 0.0025, %v330_v11  ;;  %v1076_v22 = vmul.f32 0.0025, %v587_v12 }
 0x170   :  { %v6459_v17 = vpack.c.bf16 %v1171_v10, %v1168_v9  ;;  %v1075_v25 = vmul.f32 0.0025, %v332_v15 }
 0x171   :  { %v1173_v35 = vsub.f32 %v4459_v18, %v1074_v19  ;;  %v1175_v36 = vsub.f32 0.0, %v1076_v22  ;;  %v4463_v22 = vsel %vm789_vm12, 1.0, %v7348_v4 }
 0x172   :  { %v336_v26 = vpop.f32.mrb[14].mxu0  ;;  %v592_v27 = vpop.f32.mrb[14].mxu1  ;;  %5154 = vmatprep.subr.bf16.mxu0 %v6459_v17  ;;  %v1174_v39 = vsub.f32 0.0, %v1075_v25 }
 0x173   :  { %v1077_v30 = vmul.f32 0.0025, %v336_v26  ;;  %v1079_v31 = vmul.f32 0.0025, %v592_v27  ;;  %v338_v32 = vpop.f32.mrb[15].mxu0  ;;  %v5007_v33 = vpop.f32.mrb[15].mxu1  ;;  %5156 = vmatpush1.bf16.msra.mxu0 %v6455_v13 }
 0x174   :  { %v1078_v34 = vmul.f32 0.0025, %v338_v32  ;;  %v4464_v26 = vsel %vm792_vm13, 1.0, %v7348_v4 }
 0x175   :  { %v1176_v37 = vsub.f32 %v4460_v23, %v1077_v30  ;;  %v1178_v38 = vsub.f32 0.0, %v1079_v31  ;;  %v734_v30 = vadd.s32 96, %v6409_v51  ;;  %v735_v31 = vadd.s32 104, %v6409_v51 }
 0x176   :  { %v1177_v40 = vsub.f32 0.0, %v1078_v34  ;;  %v342_v41 = vpop.f32.mrb[16].mxu0  ;;  %v597_v42 = vpop.f32.mrb[16].mxu1 }
 0x177   :  { %v6469_v43 = vpack.c.bf16 %v1176_v37, %v1173_v35  ;;  %v6471_v44 = vpack.c.bf16 %v1178_v38, %v1175_v36  ;;  %v344_v45 = vpop.f32.mrb[17].mxu0  ;;  %v5010_v46 = vpop.f32.mrb[17].mxu1  ;;  %v1080_v54 = vmul.f32 0.0025, %v342_v41  ;;  %v1082_v55 = vmul.f32 0.0025, %v597_v42 }
 0x178   :  { %v6473_v49 = vpack.c.bf16 %v1177_v40, %v1174_v39  ;;  %v1081_v57 = vmul.f32 0.0025, %v344_v45  ;;  %vm795_vm14 = vcmp.eq.s32.totalorder %v734_v30, %v6411_v52  ;;  %vm798_vm15 = vcmp.eq.s32.totalorder %v735_v31, %v6411_v52 }
 0x179   :  { %v1179_v3 = vsub.f32 %v4461_v50, %v1080_v54  ;;  %v1181_v5 = vsub.f32 0.0, %v1082_v55 }
 0x17a   :  { %v348_v58 = vpop.f32.mrb[18].mxu0  ;;  %v602_v59 = vpop.f32.mrb[18].mxu1  ;;  %5158 = vmatprep.subr.bf16.mxu0 %v6473_v49  ;;  %v1180_v8 = vsub.f32 0.0, %v1081_v57 }
 0x17b   :  { %v1083_v62 = vmul.f32 0.0025, %v348_v58  ;;  %v1085_v63 = vmul.f32 0.0025, %v602_v59  ;;  %v350_v0 = vpop.f32.mrb[19].mxu0  ;;  %v5013_v1 = vpop.f32.mrb[19].mxu1  ;;  %5160 = vmatpush1.bf16.msra.mxu0 %v6469_v43 }
 0x17c   :  { %v1084_v2 = vmul.f32 0.0025, %v350_v0  ;;  %v736_v58 = vadd.s32 112, %v6409_v51  ;;  %v4465_v59 = vsel %vm795_vm14, 1.0, %v7348_v4  ;;  %v4466_v0 = vsel %vm798_vm15, 1.0, %v7348_v4 }
 0x17d   :  { %v1182_v6 = vsub.f32 %v4462_v56, %v1083_v62  ;;  %v1184_v7 = vsub.f32 0.0, %v1085_v63 }
 0x17e   :  { %v1183_v9 = vsub.f32 0.0, %v1084_v2  ;;  %v354_v10 = vpop.f32.mrb[20].mxu0  ;;  %v607_v11 = vpop.f32.mrb[20].mxu1  ;;  %v737_v2 = vadd.s32 120, %v6409_v51  ;;  %vm801_vm1 = vcmp.eq.s32.totalorder %v736_v58, %v6411_v52 }
 0x17f   :  { %v6483_v12 = vpack.c.bf16 %v1182_v6, %v1179_v3  ;;  %v6485_v15 = vpack.c.bf16 %v1184_v7, %v1181_v5  ;;  %v356_v16 = vpop.f32.mrb[21].mxu0  ;;  %v5016_v18 = vpop.f32.mrb[21].mxu1  ;;  %v1086_v23 = vmul.f32 0.0025, %v354_v10  ;;  %v1088_v25 = vmul.f32 0.0025, %v607_v11 }
 0x180   :  { %v6487_v19 = vpack.c.bf16 %v1183_v9, %v1180_v8  ;;  %v1087_v27 = vmul.f32 0.0025, %v356_v16  ;;  %vm804_vm2 = vcmp.eq.s32.totalorder %v737_v2, %v6411_v52  ;;  %v4467_v31 = vsel %vm801_vm1, 1.0, %v7348_v4 }
 0x181   :  { %v1185_v37 = vsub.f32 %v4463_v22, %v1086_v23  ;;  %v1187_v38 = vsub.f32 0.0, %v1088_v25 }
 0x182   :  { %v360_v28 = vpop.f32.mrb[22].mxu0  ;;  %v612_v29 = vpop.f32.mrb[22].mxu1  ;;  %5162 = vmatprep.subr.bf16.mxu0 %v6487_v19  ;;  %v1186_v41 = vsub.f32 0.0, %v1087_v27 }
 0x183   :  { %v1089_v32 = vmul.f32 0.0025, %v360_v28  ;;  %v1091_v33 = vmul.f32 0.0025, %v612_v29  ;;  %v362_v34 = vpop.f32.mrb[23].mxu0  ;;  %v5019_v35 = vpop.f32.mrb[23].mxu1  ;;  %5164 = vmatpush1.bf16.msra.mxu0 %v6483_v12 }
 0x184   :  { %v1090_v36 = vmul.f32 0.0025, %v362_v34  ;;  %v4468_v34 = vsel %vm804_vm2, 1.0, %v7348_v4  ;;  %v738_v35 = vadd.s32 128, %v6409_v51 }
 0x185   :  { %v1188_v39 = vsub.f32 %v4464_v26, %v1089_v32  ;;  %v1190_v40 = vsub.f32 0.0, %v1091_v33 }
 0x186   :  { %v1189_v42 = vsub.f32 0.0, %v1090_v36  ;;  %v366_v45 = vpop.f32.mrb[24].mxu0  ;;  %v617_v46 = vpop.f32.mrb[24].mxu1 }
 0x187   :  { %v6496_v50 = vpack.c.bf16 %v1188_v39, %v1185_v37  ;;  %v6498_v54 = vpack.c.bf16 %v1190_v40, %v1187_v38  ;;  %v368_v55 = vpop.f32.mrb[25].mxu0  ;;  %v5022_v56 = vpop.f32.mrb[25].mxu1  ;;  %v1092_v60 = vmul.f32 0.0025, %v366_v45  ;;  %v1094_v61 = vmul.f32 0.0025, %v617_v46 }
 0x188   :  { %v6501_v57 = vpack.c.bf16 %v1189_v42, %v1186_v41  ;;  %v1093_v62 = vmul.f32 0.0025, %v368_v55  ;;  %v6522_v39 = vadd.s32 128, %v6411_v52  ;;  %v739_v40 = vadd.s32 136, %v6409_v51 }
 0x189   :  { %v1191_v9 = vsub.f32 %v4465_v59, %v1092_v60  ;;  %v1193_v10 = vsub.f32 0.0, %v1094_v61 }
 0x18a   :  { %v372_v63 = vpop.f32.mrb[26].mxu0  ;;  %v622_v1 = vpop.f32.mrb[26].mxu1  ;;  %5166 = vmatprep.subr.bf16.mxu0 %v6501_v57  ;;  %v1192_v18 = vsub.f32 0.0, %v1093_v62  ;;  %vm808_vm3 = vcmp.eq.s32.totalorder %v738_v35, %v6522_v39  ;;  %vm811_vm4 = vcmp.eq.s32.totalorder %v739_v40, %v6522_v39 }
 0x18b   :  { %v1095_v3 = vmul.f32 0.0025, %v372_v63  ;;  %v1097_v5 = vmul.f32 0.0025, %v622_v1  ;;  %v374_v6 = vpop.f32.mrb[27].mxu0  ;;  %v5025_v7 = vpop.f32.mrb[27].mxu1  ;;  %5168 = vmatpush1.bf16.msra.mxu0 %v6496_v50 }
 0x18c   :  { %v1096_v8 = vmul.f32 0.0025, %v374_v6 }
 0x18d   :  { %v1194_v11 = vsub.f32 %v4466_v0, %v1095_v3  ;;  %v1196_v16 = vsub.f32 0.0, %v1097_v5 }
 0x18e   :  { %v1195_v22 = vsub.f32 0.0, %v1096_v8  ;;  %v378_v23 = vpop.f32.mrb[28].mxu0  ;;  %v627_v25 = vpop.f32.mrb[28].mxu1 }
 0x18f   :  { %v6511_v26 = vpack.c.bf16 %v1194_v11, %v1191_v9  ;;  %v6513_v27 = vpack.c.bf16 %v1196_v16, %v1193_v10  ;;  %v380_v28 = vpop.f32.mrb[29].mxu0  ;;  %v5028_v29 = vpop.f32.mrb[29].mxu1  ;;  %v1098_v32 = vmul.f32 0.0025, %v378_v23  ;;  %v1100_v33 = vmul.f32 0.0025, %v627_v25 }
 0x190   :  { %v6515_v30 = vpack.c.bf16 %v1195_v22, %v1192_v18  ;;  %v1099_v36 = vmul.f32 0.0025, %v380_v28  ;;  %v4469_v9 = vsel %vm808_vm3, 1.0, %v7348_v4  ;;  %v4470_v10 = vsel %vm811_vm4, 1.0, %v7348_v4 }
 0x191   :  { %v1197_v56 = vsub.f32 %v4467_v31, %v1098_v32  ;;  %v1199_v58 = vsub.f32 0.0, %v1100_v33  ;;  %v740_v22 = vadd.s32 144, %v6409_v51  ;;  %v741_v23 = vadd.s32 152, %v6409_v51 }
 0x192   :  { %v384_v37 = vpop.f32.mrb[30].mxu0  ;;  %v632_v38 = vpop.f32.mrb[30].mxu1  ;;  %5170 = vmatprep.subr.bf16.mxu0 %v6515_v30  ;;  %v1198_v61 = vsub.f32 0.0, %v1099_v36 }
 0x193   :  { %v1101_v41 = vmul.f32 0.0025, %v384_v37  ;;  %v1103_v42 = vmul.f32 0.0025, %v632_v38  ;;  %v386_v45 = vpop.f32.mrb[31].mxu0  ;;  %v5031_v46 = vpop.f32.mrb[31].mxu1  ;;  %5172 = vmatpush1.bf16.msra.mxu0 %v6511_v26  ;;  %vm814_vm5 = vcmp.eq.s32.totalorder %v740_v22, %v6522_v39  ;;  %vm817_vm6 = vcmp.eq.s32.totalorder %v741_v23, %v6522_v39 }
 0x194   :  { %v1102_v55 = vmul.f32 0.0025, %v386_v45 }
 0x195   :  { %v1200_v59 = vsub.f32 %v4468_v34, %v1101_v41  ;;  %v1202_v60 = vsub.f32 0.0, %v1103_v42 }
 0x196   :  { %v1201_v62 = vsub.f32 0.0, %v1102_v55  ;;  %v390_v63 = vpop.f32.mrb[32].mxu0  ;;  %v637_v0 = vpop.f32.mrb[32].mxu1 }
 0x197   :  { %v6528_v1 = vpack.c.bf16 %v1200_v59, %v1197_v56  ;;  %v6530_v2 = vpack.c.bf16 %v1202_v60, %v1199_v58  ;;  %v392_v3 = vpop.f32.mrb[33].mxu0  ;;  %v5034_v5 = vpop.f32.mrb[33].mxu1  ;;  %v1104_v7 = vmul.f32 0.0025, %v390_v63  ;;  %v1106_v8 = vmul.f32 0.0025, %v637_v0 }
 0x198   :  { %v6532_v6 = vpack.c.bf16 %v1201_v62, %v1198_v61  ;;  %v1105_v11 = vmul.f32 0.0025, %v392_v3  ;;  %v4471_v60 = vsel %vm814_vm5, 1.0, %v7348_v4  ;;  %v4472_v61 = vsel %vm817_vm6, 1.0, %v7348_v4 }
 0x199   :  { %v1203_v33 = vsub.f32 0.0, %v1104_v7  ;;  %v1205_v34 = vsub.f32 0.0, %v1106_v8  ;;  %v742_v3 = vadd.s32 160, %v6409_v51  ;;  %v743_v5 = vadd.s32 168, %v6409_v51 }
 0x19a   :  { %v396_v16 = vpop.f32.mrb[34].mxu0  ;;  %v642_v18 = vpop.f32.mrb[34].mxu1  ;;  %5174 = vmatprep.subr.bf16.mxu0 %v6532_v6  ;;  %v1204_v37 = vsub.f32 %v4469_v9, %v1105_v11  ;;  %vm1273_vm5 = vcmask 1042432   ;;  %vm1270_vm6 = vcmask 23552  }
 0x19b   :  { %v1107_v25 = vmul.f32 0.0025, %v396_v16  ;;  %v1109_v28 = vmul.f32 0.0025, %v642_v18  ;;  %v398_v29 = vpop.f32.mrb[35].mxu0  ;;  %v5037_v31 = vpop.f32.mrb[35].mxu1  ;;  %5176 = vmatpush1.bf16.msra.mxu0 %v6528_v1  ;;  %vm820_vm7 = vcmp.eq.s32.totalorder %v742_v3, %v6522_v39  ;;  %vm823_vm8 = vcmp.eq.s32.totalorder %v743_v5, %v6522_v39 }
 0x19c   :  { %v1108_v32 = vmul.f32 0.0025, %v398_v29 }
 0x19d   :  { %v1206_v35 = vsub.f32 0.0, %v1107_v25  ;;  %v1208_v36 = vsub.f32 0.0, %v1109_v28 }
 0x19e   :  { %v1207_v38 = vsub.f32 %v4470_v10, %v1108_v32  ;;  %v647_v40 = vpop.f32.mrb[36].mxu1  ;;  %v402_v41 = vpop.f32.mrb[36].mxu0 }
 0x19f   :  { %v6542_v42 = vpack.c.bf16 %v1206_v35, %v1203_v33  ;;  %v6544_v45 = vpack.c.bf16 %v1208_v36, %v1205_v34  ;;  %v5040_v46 = vpop.f32.mrb[37].mxu1  ;;  %v404_v55 = vpop.f32.mrb[37].mxu0  ;;  %v1112_v58 = vmul.f32 0.0025, %v647_v40  ;;  %v1110_v59 = vmul.f32 0.0025, %v402_v41 }
 0x1a0   :  { %v6546_v56 = vpack.c.bf16 %v1207_v38, %v1204_v37  ;;  %v1111_v63 = vmul.f32 0.0025, %v404_v55  ;;  %v4473_v40 = vsel %vm820_vm7, 1.0, %v7348_v4  ;;  %v4474_v41 = vsel %vm823_vm8, 1.0, %v7348_v4 }
 0x1a1   :  { %5210 = vmatprep.subr.bf16.mxu1 %v6544_v45  ;;  %v1211_v16 = vsub.f32 0.0, %v1112_v58  ;;  %v1209_v22 = vsub.f32 0.0, %v1110_v59  ;;  %v744_v59 = vadd.s32 176, %v6409_v51 }
 0x1a2   :  { %v652_v62 = vpop.f32.mrb[38].mxu1  ;;  %5178 = vmatprep.subr.bf16.mxu0 %v6546_v56  ;;  %5212 = vmatpush3.bf16.msra.mxu1 %v6429_v21  ;;  %v408_v0 = vpop.f32.mrb[38].mxu0  ;;  %v1210_v25 = vsub.f32 %v4471_v60, %v1111_v63  ;;  %v745_v60 = vadd.s32 184, %v6409_v51 }
 0x1a3   :  { %v1115_v7 = vmul.f32 0.0025, %v652_v62  ;;  %5180 = vmatpush1.bf16.msra.mxu0 %v6542_v42  ;;  %v1113_v8 = vmul.f32 0.0025, %v408_v0  ;;  %v410_v9 = vpop.f32.mrb[39].mxu0  ;;  %v5043_v10 = vpop.f32.mrb[39].mxu1  ;;  %vm826_vm9 = vcmp.eq.s32.totalorder %v744_v59, %v6522_v39 }
 0x1a4   :  { %v1114_v11 = vmul.f32 0.0025, %v410_v9  ;;  %vm829_vm10 = vcmp.eq.s32.totalorder %v745_v60, %v6522_v39 }
 0x1a5   :  { %v1214_v18 = vsub.f32 0.0, %v1115_v7  ;;  %v1212_v23 = vsub.f32 0.0, %v1113_v8 }
 0x1a6   :  { %v1213_v28 = vsub.f32 %v4472_v61, %v1114_v11  ;;  %v657_v29 = vpop.f32.mrb[40].mxu1  ;;  %v414_v31 = vpop.f32.mrb[40].mxu0 }
 0x1a7   :  { %v6558_v32 = vpack.c.bf16 %v1214_v18, %v1211_v16  ;;  %v6560_v33 = vpack.c.bf16 %v1212_v23, %v1209_v22  ;;  %v5046_v34 = vpop.f32.mrb[41].mxu1  ;;  %v416_v35 = vpop.f32.mrb[41].mxu0  ;;  %v1118_v37 = vmul.f32 0.0025, %v657_v29  ;;  %v1116_v38 = vmul.f32 0.0025, %v414_v31 }
 0x1a8   :  { %v6562_v36 = vpack.c.bf16 %v1213_v28, %v1210_v25  ;;  %v1117_v55 = vmul.f32 0.0025, %v416_v35  ;;  %v4475_v35 = vsel %vm826_vm9, 1.0, %v7348_v4 }
 0x1a9   :  { %5214 = vmatprep.subr.bf16.mxu1 %v6558_v32  ;;  %v1217_v5 = vsub.f32 0.0, %v1118_v37  ;;  %v1215_v8 = vsub.f32 0.0, %v1116_v38  ;;  %v4476_v37 = vsel %vm829_vm10, 1.0, %v7348_v4 }
 0x1aa   :  { %v662_v46 = vpop.f32.mrb[42].mxu1  ;;  %5216 = vmatpush3.bf16.msra.mxu1 %v6443_v48  ;;  %5182 = vmatprep.subr.bf16.mxu0 %v6562_v36  ;;  %v420_v58 = vpop.f32.mrb[42].mxu0  ;;  %v1216_v11 = vsub.f32 %v4473_v40, %v1117_v55  ;;  %v747_v55 = vadd.s32 200, %v6409_v51 }
 0x1ab   :  { %v1121_v61 = vmul.f32 0.0025, %v662_v46  ;;  %5184 = vmatpush1.bf16.msra.mxu0 %v6560_v33  ;;  %v5049_v62 = vpop.f32.mrb[43].mxu1  ;;  %v1119_v63 = vmul.f32 0.0025, %v420_v58  ;;  %v422_v0 = vpop.f32.mrb[43].mxu0 }
 0x1ac   :  { %v1120_v3 = vmul.f32 0.0025, %v422_v0  ;;  %v746_v46 = vadd.s32 192, %v6409_v51  ;;  %vm835_vm12 = vcmp.eq.s32.totalorder %v747_v55, %v6522_v39  ;;  %v749_v55 = vadd.s32 216, %v6409_v51 }
 0x1ad   :  { %v1220_v7 = vsub.f32 0.0, %v1121_v61  ;;  %v1218_v9 = vsub.f32 0.0, %v1119_v63 }
 0x1ae   :  { %v667_v10 = vpop.f32.mrb[44].mxu1  ;;  %v1219_v16 = vsub.f32 %v4474_v41, %v1120_v3  ;;  %v426_v18 = vpop.f32.mrb[44].mxu0  ;;  %vm832_vm11 = vcmp.eq.s32.totalorder %v746_v46, %v6522_v39  ;;  %v748_v46 = vadd.s32 208, %v6409_v51  ;;  %vm841_vm14 = vcmp.eq.s32.totalorder %v749_v55, %v6522_v39 }
 0x1af   :  { %v6574_v22 = vpack.c.bf16 %v1220_v7, %v1217_v5  ;;  %v5052_v23 = vpop.f32.mrb[45].mxu1  ;;  %v6576_v25 = vpack.c.bf16 %v1218_v9, %v1215_v8  ;;  %v428_v28 = vpop.f32.mrb[45].mxu0  ;;  %v1124_v31 = vmul.f32 0.0025, %v667_v10  ;;  %v1122_v34 = vmul.f32 0.0025, %v426_v18 }
 0x1b0   :  { %v6578_v29 = vpack.c.bf16 %v1219_v16, %v1216_v11  ;;  %v1123_v40 = vmul.f32 0.0025, %v428_v28  ;;  %vm838_vm13 = vcmp.eq.s32.totalorder %v748_v46, %v6522_v39 }
 0x1b1   :  { %5218 = vmatprep.subr.bf16.mxu1 %v6574_v22  ;;  %v1223_v63 = vsub.f32 0.0, %v1124_v31  ;;  %v1221_v3 = vsub.f32 0.0, %v1122_v34 }
 0x1b2   :  { %v672_v38 = vpop.f32.mrb[46].mxu1  ;;  %5220 = vmatpush3.bf16.msra.mxu1 %v6457_v14  ;;  %5186 = vmatprep.subr.bf16.mxu0 %v6578_v29  ;;  %v432_v41 = vpop.f32.mrb[46].mxu0  ;;  %v1222_v8 = vsub.f32 %v4475_v35, %v1123_v40  ;;  %v4477_v35 = vsel %vm832_vm11, 1.0, %v7348_v4 }
 0x1b3   :  { %v1127_v58 = vmul.f32 0.0025, %v672_v38  ;;  %v5055_v59 = vpop.f32.mrb[47].mxu1  ;;  %5188 = vmatpush1.bf16.msra.mxu0 %v6576_v25  ;;  %v1125_v60 = vmul.f32 0.0025, %v432_v41  ;;  %v434_v61 = vpop.f32.mrb[47].mxu0 }
 0x1b4   :  { %v1126_v62 = vmul.f32 0.0025, %v434_v61 }
 0x1b5   :  { %v1226_v0 = vsub.f32 0.0, %v1127_v58  ;;  %v1224_v5 = vsub.f32 0.0, %v1125_v60 }
 0x1b6   :  { %v677_v7 = vpop.f32.mrb[48].mxu1  ;;  %v1225_v9 = vsub.f32 %v4476_v37, %v1126_v62  ;;  %v438_v10 = vpop.f32.mrb[48].mxu0  ;;  %v4478_v37 = vsel %vm835_vm12, 1.0, %v7348_v4 }
 0x1b7   :  { %v6590_v11 = vpack.c.bf16 %v1226_v0, %v1223_v63  ;;  %v5058_v16 = vpop.f32.mrb[49].mxu1  ;;  %v6592_v18 = vpack.c.bf16 %v1224_v5, %v1221_v3  ;;  %v440_v23 = vpop.f32.mrb[49].mxu0  ;;  %v1130_v31 = vmul.f32 0.0025, %v677_v7  ;;  %v1128_v34 = vmul.f32 0.0025, %v438_v10 }
 0x1b8   :  { %v6594_v28 = vpack.c.bf16 %v1225_v9, %v1222_v8  ;;  %v1129_v40 = vmul.f32 0.0025, %v440_v23 }
 0x1b9   :  { %7369 = vst [vmem:[#allocation3_spill] sm:$0xff] %v6592_v18  ;;  %5222 = vmatprep.subr.bf16.mxu1 %v6590_v11  ;;  %v1229_v63 = vsub.f32 0.0, %v1130_v31  ;;  %v1227_v3 = vsub.f32 0.0, %v1128_v34 }
 0x1ba   :  { %7370 = vst [vmem:[#allocation4_spill] sm:$0xff] %v6594_v28  ;;  %v682_v38 = vpop.f32.mrb[50].mxu1  ;;  %5224 = vmatpush3.bf16.msra.mxu1 %v6471_v44  ;;  %v444_v41 = vpop.f32.mrb[50].mxu0  ;;  %5190 = vmatprep.subr.bf16.mxu0 %v6594_v28  ;;  %v1228_v8 = vsub.f32 %v4477_v35, %v1129_v40  ;;  %v4479_v35 = vsel %vm838_vm13, 1.0, %v7348_v4 }
 0x1bb   :  { %v1133_v58 = vmul.f32 0.0025, %v682_v38  ;;  %v5061_v59 = vpop.f32.mrb[51].mxu1  ;;  %v1131_v60 = vmul.f32 0.0025, %v444_v41  ;;  %v446_v61 = vpop.f32.mrb[51].mxu0  ;;  %5192 = vmatpush1.bf16.msra.mxu0 %v6592_v18 }
 0x1bc   :  { %v1132_v62 = vmul.f32 0.0025, %v446_v61 }
 0x1bd   :  { %v1232_v0 = vsub.f32 0.0, %v1133_v58  ;;  %v1230_v5 = vsub.f32 0.0, %v1131_v60  ;;  %v750_v58 = vadd.s32 224, %v6409_v51  ;;  %v751_v60 = vadd.s32 232, %v6409_v51 }
 0x1be   :  { %v687_v7 = vpop.f32.mrb[52].mxu1  ;;  %v1231_v9 = vsub.f32 %v4478_v37, %v1132_v62  ;;  %v450_v10 = vpop.f32.mrb[52].mxu0  ;;  %v4480_v37 = vsel %vm841_vm14, 1.0, %v7348_v4 }
 0x1bf   :  { %v6606_v16 = vpack.c.bf16 %v1232_v0, %v1229_v63  ;;  %v5064_v23 = vpop.f32.mrb[53].mxu1  ;;  %v6608_v38 = vpack.c.bf16 %v1230_v5, %v1227_v3  ;;  %v452_v41 = vpop.f32.mrb[53].mxu0  ;;  %v1136_v31 = vmul.f32 0.0025, %v687_v7  ;;  %v1134_v34 = vmul.f32 0.0025, %v450_v10 }
 0x1c0   :  { %v6610_v59 = vpack.c.bf16 %v1231_v9, %v1228_v8  ;;  %v1135_v46 = vmul.f32 0.0025, %v452_v41  ;;  %vm844_vm15 = vcmp.eq.s32.totalorder %v750_v58, %v6522_v39  ;;  %vm847_vm1 = vcmp.eq.s32.totalorder %v751_v60, %v6522_v39 }
 0x1c1   :  { %7371 = vst [vmem:[#allocation5_spill] sm:$0xff] %v6608_v38  ;;  %5226 = vmatprep.subr.bf16.mxu1 %v6606_v16  ;;  %v1235_v5 = vsub.f32 0.0, %v1136_v31  ;;  %v1233_v8 = vsub.f32 0.0, %v1134_v34 }
 0x1c2   :  { %7372 = vst [vmem:[#allocation6_spill] sm:$0xff] %v6610_v59  ;;  %v692_v40 = vpop.f32.mrb[54].mxu1  ;;  %5228 = vmatpush3.bf16.msra.mxu1 %v6485_v15  ;;  %v456_v55 = vpop.f32.mrb[54].mxu0  ;;  %5194 = vmatprep.subr.bf16.mxu0 %v6610_v59  ;;  %v1234_v23 = vsub.f32 %v4479_v35, %v1135_v46 }
 0x1c3   :  { %v1139_v61 = vmul.f32 0.0025, %v692_v40  ;;  %v5067_v62 = vpop.f32.mrb[55].mxu1  ;;  %v1137_v63 = vmul.f32 0.0025, %v456_v55  ;;  %v458_v0 = vpop.f32.mrb[55].mxu0  ;;  %5196 = vmatpush1.bf16.msra.mxu0 %v6608_v38 }
 0x1c4   :  { %v1138_v3 = vmul.f32 0.0025, %v458_v0  ;;  %v753_v0 = vadd.s32 248, %v6409_v51 }
 0x1c5   :  { %v1238_v7 = vsub.f32 0.0, %v1139_v61  ;;  %v1236_v9 = vsub.f32 0.0, %v1137_v63  ;;  %v7375_v61 = vmov 0.0   ;;  %v752_v63 = vadd.s32 240, %v6409_v51 }
 0x1c6   :  { %v697_v10 = vpop.f32.mrb[56].mxu1  ;;  %v1237_v41 = vsub.f32 %v4480_v37, %v1138_v3  ;;  %v462_v4 = vpop.f32.mrb[56].mxu0  ;;  %v4481_v35 = vsel %vm844_vm15, 1.0, %v7375_v61  ;;  %v4482_v37 = vsel %vm847_vm1, 1.0, %v7375_v61  ;;  %vm853_vm3 = vcmp.eq.s32.totalorder %v753_v0, %v6522_v39 }
 0x1c7   :  { %v6622_v59 = vpack.c.bf16 %v1238_v7, %v1235_v5  ;;  %v5070_v40 = vpop.f32.mrb[57].mxu1  ;;  %v6624_v55 = vpack.c.bf16 %v1236_v9, %v1233_v8  ;;  %v464_v62 = vpop.f32.mrb[57].mxu0  ;;  %v1142_v31 = vmul.f32 0.0025, %v697_v10  ;;  %v1140_v34 = vmul.f32 0.0025, %v462_v4 }
 0x1c8   :  { %v6626_v38 = vpack.c.bf16 %v1237_v41, %v1234_v23  ;;  %v1141_v58 = vmul.f32 0.0025, %v464_v62  ;;  %vm850_vm2 = vcmp.eq.s32.totalorder %v752_v63, %v6522_v39 }
 0x1c9   :  { %7373 = vst [vmem:[#allocation7_spill] sm:$0xff] %v6624_v55  ;;  %5230 = vmatprep.subr.bf16.mxu1 %v6622_v59  ;;  %v1241_v9 = vsub.f32 0.0, %v1142_v31  ;;  %v1239_v23 = vsub.f32 0.0, %v1140_v34  ;;  %v758_v31 = vadd.s32 256, %v6411_v52 }
 0x1ca   :  { %7374 = vst [vmem:[#allocation8_spill] sm:$0xff] %v6626_v38  ;;  %v702_v46 = vpop.f32.mrb[58].mxu1  ;;  %5232 = vmatpush3.bf16.msra.mxu1 %v6498_v54  ;;  %v468_v60 = vpop.f32.mrb[58].mxu0  ;;  %5198 = vmatprep.subr.bf16.mxu0 %v6626_v38  ;;  %v1240_v40 = vsub.f32 %v4481_v35, %v1141_v58  ;;  %v4483_v58 = vsel %vm850_vm2, 1.0, %v7375_v61 }
 0x1cb   :  { %v1145_v3 = vmul.f32 0.0025, %v702_v46  ;;  %v1143_v5 = vmul.f32 0.0025, %v468_v60  ;;  %v470_v7 = vpop.f32.mrb[59].mxu0  ;;  %v5073_v8 = vpop.f32.mrb[59].mxu1  ;;  %5200 = vmatpush1.bf16.msra.mxu0 %v6624_v55 }
 0x1cc   :  { %v1144_v4 = vmul.f32 0.0025, %v470_v7  ;;  %v754_v7 = vadd.s32 256, %v6409_v51 }
 0x1cd   :  { %v1244_v10 = vsub.f32 0.0, %v1145_v3  ;;  %v1242_v41 = vsub.f32 0.0, %v1143_v5 }
 0x1ce   :  { %v1243_v62 = vsub.f32 %v4482_v37, %v1144_v4  ;;  %v474_v18 = vpop.f32.mrb[60].mxu0  ;;  %v707_v28 = vpop.f32.mrb[60].mxu1  ;;  %v4484_v4 = vsel %vm853_vm3, 1.0, %v7375_v61  ;;  %vm857_vm4 = vcmp.eq.s32.totalorder %v754_v7, %v758_v31 }
 0x1cf   :  { %v6638_v38 = vpack.c.bf16 %v1244_v10, %v1241_v9  ;;  %v6640_v46 = vpack.c.bf16 %v1242_v41, %v1239_v23  ;;  %v476_v60 = vpop.f32.mrb[61].mxu0  ;;  %v5076_v8 = vpop.f32.mrb[61].mxu1  ;;  %v1146_v35 = vmul.f32 0.0025, %v474_v18  ;;  %v1148_v37 = vmul.f32 0.0025, %v707_v28 }
 0x1d0   :  { %v6644_v34 = vpack.c.bf16 %v1243_v62, %v1240_v40  ;;  %v1147_v63 = vmul.f32 0.0025, %v476_v60  ;;  %v1258_v41 = vsub.s32 0, %v6409_v51 }
 0x1d1   :  { %7376 = vst [vmem:[#allocation9_spill] sm:$0xff] %v6640_v46  ;;  %5234 = vmatprep.subr.bf16.mxu1 %v6638_v38  ;;  %v1245_v40 = vsub.f32 0.0, %v1146_v35  ;;  %v1247_v62 = vsub.f32 0.0, %v1148_v37  ;;  %v6174_v37 = vld [vmem:[%s7344_s2] sm:$0x7] }
 0x1d2   :  { %7377 = vst [vmem:[#allocation10_spill] sm:$0xff] %v6644_v34  ;;  %v480_v3 = vpop.f32.mrb[62].mxu0  ;;  %v712_v5 = vpop.f32.mrb[62].mxu1  ;;  %5236 = vmatpush3.bf16.msra.mxu1 %v6513_v27  ;;  %5202 = vmatprep.subr.bf16.mxu0 %v6644_v34  ;;  %v1246_v52 = vsub.f32 %v4483_v58, %v1147_v63  ;;  %v4485_v34 = vsel %vm857_vm4, 1.0, %v7375_v61  ;;  %v1259_v58 = vrot.slane %v6174_v37, %v1258_v41  ;;  %v1266_v63 = vsub.s32 2, %v6409_v51  ;;  %v7378_v51 = vld [vmem:[#allocation4_spill] sm:$0xff] }
 0x1d3   :  { %v1149_v9 = vmul.f32 0.0025, %v480_v3  ;;  %v1151_v10 = vmul.f32 0.0025, %v712_v5  ;;  %v482_v23 = vpop.f32.mrb[63].mxu0  ;;  %5204 = vmatpush1.bf16.msra.mxu0 %v6640_v46  ;;  %v5079_v18 = vpop.f32.mrb[63].mxu1 }
 0x1d4   :  { %v1150_v28 = vmul.f32 0.0025, %v482_v23  ;;  %v7383_v41 = vld [vmem:[#allocation7_spill] sm:$0xff] }
 0x1d5   :  { %v1248_v60 = vsub.f32 0.0, %v1149_v9  ;;  %v1250_v8 = vsub.f32 0.0, %v1151_v10  ;;  %v7381_v10 = vld [vmem:[#allocation5_spill] sm:$0xff] }
 0x1d6   :  { %v1249_v55 = vsub.f32 %v4484_v4, %v1150_v28  ;;  %v486_v39 = vpop.f32.mrb[64].mxu0  ;;  %v717_v0 = vpop.f32.mrb[64].mxu1  ;;  %v7382_v28 = vld [vmem:[#allocation8_spill] sm:$0xff] }
 0x1d7   :  { %v6656_v3 = vpack.c.bf16 %v1248_v60, %v1245_v40  ;;  %v6658_v5 = vpack.c.bf16 %v1250_v8, %v1247_v62  ;;  %v1152_v46 = vmul.f32 0.0025, %v486_v39  ;;  %v488_v18 = vpop.f32.mrb[65].mxu0  ;;  %v1154_v7 = vmul.f32 0.0025, %v717_v0  ;;  %v5082_v31 = vpop.f32.mrb[65].mxu1 }
 0x1d8   :  { %v6660_v23 = vpack.c.bf16 %v1249_v55, %v1246_v52  ;;  %v1153_v35 = vmul.f32 0.0025, %v488_v18  ;;  %v1267_v55 = vrot.slane %v6174_v37, %v1266_v63  ;;  %v7385_v62 = vld [vmem:[#allocation9_spill] sm:$0xff] }
 0x1d9   :  { %5238 = vmatprep.subr.bf16.mxu1 %v6658_v5  ;;  %v6669_v9 = vsub.f32 %v4485_v34, %v1154_v7  ;;  %v6673_v52 = vsub.f32 0.0, %v1152_v46  ;;  %v7379_v46 = vld [vmem:[#allocation3_spill] sm:$0xff]  ;;  %v7380_v34 = vld [vmem:[#allocation6_spill] sm:$0xff] }
 0x1da   :  { %v6667_v4 = vsub.f32 0.0, %v1153_v35  ;;  %5206 = vmatprep.subr.bf16.mxu0 %v6660_v23  ;;  %5240 = vmatpush3.bf16.msra.mxu1 %v6530_v2  ;;  %v7384_v40 = vld [vmem:[#allocation10_spill] sm:$0xff] }
 0x1db   :  { %5208 = vmatpush1.bf16.msra.mxu0 %v6656_v3  ;;  %5083 = vmatprep.subr.mxu1 %v7375_v61 }
 0x1dc   :  { %4486 = vmatprep.subr.msk.mxu0 %vm1273_vm5, %v6667_v4 }
 0x1dd   :  { %1490 = vmatmul.mubr.f32.vlgmr.msra.gmra.mrb[66].mxu1 %v1259_v58 }
 0x1de   :  { %1348 = vmatmul.mubr.f32.vlgmr.msra.gmra.mrb[66].mxu0 %v1259_v58  ;;  %5084 = vmatpush3.msk.msra.mxu1 %vm1273_vm5, %v6669_v9 }
 0x1df   :  { %4487 = vmatpush1.msk.msra.mxu0 %vm1273_vm5, %v6673_v52  ;;  %5306 = vmatprep.subr.bf16.mxu1 %v6544_v45 }
 0x1e0   :  { %5085 = vmatprep.mubr.msk.f32.mxu1 %vm6177_vm0, %v7375_v61  ;;  %5242 = vmatprep.subr.bf16.mxu0 %v6431_v24 }
 0x1e1   :  { %5086 = vmatmul.mubr.msk.f32.vlgmr.msra.gmra.mrb[68].mxu1 %vm1270_vm6, %v1267_v55  ;;  %1418 = vmatprep.mubr.f32.mxu0 %v7375_v61 }
 0x1e2   :  { %5308 = vmatpush3.bf16.msra.mxu1 %v6429_v21 }
 0x1e3   :  { %5310 = vmatprep.subr.bf16.mxu1 %v6558_v32 }
 0x1e6   :  { %5312 = vmatpush3.bf16.msra.mxu1 %v6443_v48  ;;  %4488 = vmatmul.mubr.msk.f32.vlgmr.msra.gmra.mrb[66].mxu0 %vm1270_vm6, %v1267_v55 }
 0x1e7   :  { %5244 = vmatpush1.bf16.msra.mxu0 %v6427_v20  ;;  %5314 = vmatprep.subr.bf16.mxu1 %v6574_v22 }
 0x1e8   :  { %5246 = vmatprep.subr.bf16.mxu0 %v6445_v53 }
 0x1ea   :  { %5316 = vmatpush3.bf16.msra.mxu1 %v6457_v14 }
 0x1eb   :  { %5248 = vmatpush1.bf16.msra.mxu0 %v6441_v47  ;;  %5318 = vmatprep.subr.bf16.mxu1 %v6590_v11 }
 0x1ec   :  { %5250 = vmatprep.subr.bf16.mxu0 %v6459_v17 }
 0x1ee   :  { %5320 = vmatpush3.bf16.msra.mxu1 %v6471_v44 }
 0x1ef   :  { %5252 = vmatpush1.bf16.msra.mxu0 %v6455_v13  ;;  %5322 = vmatprep.subr.bf16.mxu1 %v6606_v16 }
 0x1f0   :  { %5254 = vmatprep.subr.bf16.mxu0 %v6473_v49 }
 0x1f2   :  { %5324 = vmatpush3.bf16.msra.mxu1 %v6485_v15 }
 0x1f3   :  { %5256 = vmatpush1.bf16.msra.mxu0 %v6469_v43  ;;  %5326 = vmatprep.subr.bf16.mxu1 %v6622_v59 }
 0x1f4   :  { %5258 = vmatprep.subr.bf16.mxu0 %v6487_v19 }
 0x1f6   :  { %5328 = vmatpush3.bf16.msra.mxu1 %v6498_v54 }
 0x1f7   :  { %5260 = vmatpush1.bf16.msra.mxu0 %v6483_v12  ;;  %5330 = vmatprep.subr.bf16.mxu1 %v6638_v38 }
 0x1f8   :  { %5262 = vmatprep.subr.bf16.mxu0 %v6501_v57 }
 0x1fa   :  { %5332 = vmatpush3.bf16.msra.mxu1 %v6513_v27 }
 0x1fb   :  { %5264 = vmatpush1.bf16.msra.mxu0 %v6496_v50  ;;  %5334 = vmatprep.subr.bf16.mxu1 %v6658_v5 }
 0x1fc   :  { %5266 = vmatprep.subr.bf16.mxu0 %v6515_v30 }
 0x1fe   :  { %5336 = vmatpush3.bf16.msra.mxu1 %v6530_v2 }
 0x1ff   :  { %5268 = vmatpush1.bf16.msra.mxu0 %v6511_v26  ;;  %5088 = vmatprep.subr.mxu1 %v7375_v61 }
 0x200   :  { %5270 = vmatprep.subr.bf16.mxu0 %v6532_v6 }
 0x203   :  { %5272 = vmatpush1.bf16.msra.mxu0 %v6528_v1 }
 0x204   :  { %5274 = vmatprep.subr.bf16.mxu0 %v6546_v56 }
 0x207   :  { %5276 = vmatpush1.bf16.msra.mxu0 %v6542_v42 }
 0x208   :  { %5278 = vmatprep.subr.bf16.mxu0 %v6562_v36 }
 0x20b   :  { %5280 = vmatpush1.bf16.msra.mxu0 %v6560_v33 }
 0x20c   :  { %5282 = vmatprep.subr.bf16.mxu0 %v6578_v29 }
 0x20f   :  { %5284 = vmatpush1.bf16.msra.mxu0 %v6576_v25 }
 0x210   :  { %5286 = vmatprep.subr.bf16.mxu0 %v7378_v51 }
 0x213   :  { %5288 = vmatpush1.bf16.msra.mxu0 %v7379_v46 }
 0x214   :  { %5290 = vmatprep.subr.bf16.mxu0 %v7380_v34 }
 0x217   :  { %5292 = vmatpush1.bf16.msra.mxu0 %v7381_v10 }
 0x218   :  { %5294 = vmatprep.subr.bf16.mxu0 %v7382_v28 }
 0x21b   :  { %5296 = vmatpush1.bf16.msra.mxu0 %v7383_v41 }
 0x21c   :  { %5298 = vmatprep.subr.bf16.mxu0 %v7384_v40 }
 0x21f   :  { %5300 = vmatpush1.bf16.msra.mxu0 %v7385_v62 }
 0x220   :  { %5302 = vmatprep.subr.bf16.mxu0 %v6660_v23 }
 0x223   :  { %5304 = vmatpush1.bf16.msra.mxu0 %v6656_v3 }
 0x224   :  { %4491 = vmatprep.subr.msk.mxu0 %vm1273_vm5, %v6667_v4 }
 0x2b0   :  { %v4605_v60 = vpop.f32.mrb[66].mxu1 }
 0x2b1   :  { %v4606_v8 = vpop.f32.mrb[67].mxu1 }
 0x2b2   :  { %v4607_v39 = vadd.f32 %v4606_v8, %v4605_v60 }
 0x2b4   :  { %v1561_v0 = vpop.f32.mrb[68].mxu1 }
 0x2b5   :  { %v1562_v18 = vadd.f32 %v4607_v39, %v1561_v0  ;;  %v5087_v7 = vpop.f32.mrb[69].mxu1 }
 0x2b9   :  { %v1420_v31 = vpop.f32.mrb[66].mxu0 }
 0x2ba   :  { %v1422_v35 = vpop.f32.mrb[67].mxu0 }
 0x2bb   :  { %1632 = vmatprep.mubr.f32.mxu0 %v1422_v35  ;;  %1774 = vmatprep.mubr.f32.mxu1 %v1422_v35 }
 0x2bc   :  { %1633 = vmatmul.mubr.f32.vlgmr.msra.gmra.mrb[68].mxu0 %v1420_v31  ;;  %1775 = vmatmul.mubr.f32.vlgmr.msra.gmra.mrb[70].mxu1 %v1420_v31 }
 0x2bd   :  { %4492 = vmatpush1.msk.msra.mxu0 %vm1273_vm5, %v6673_v52  ;;  %5089 = vmatpush3.msk.msra.mxu1 %vm1273_vm5, %v6669_v9 }
 0x2be   :  { %5338 = vmatprep.subr.bf16.mxu1 %v6431_v24  ;;  %5402 = vmatprep.subr.bf16.mxu0 %v6544_v45 }
 0x2bf   :  { %5090 = vmatprep.mubr.msk.f32.mxu1 %vm6177_vm0, %v7375_v61  ;;  %1703 = vmatprep.mubr.f32.mxu0 %v7375_v61 }
 0x2c0   :  { %5091 = vmatmul.mubr.msk.f32.vlgmr.msra.gmra.mrb[72].mxu1 %vm1270_vm6, %v1562_v18 }
 0x2c1   :  { %5340 = vmatpush1.bf16.msra.mxu1 %v6427_v20 }
 0x2c2   :  { %5342 = vmatprep.subr.bf16.mxu1 %v6445_v53 }
 0x2c4   :  { %4493 = vmatmul.mubr.msk.f32.vlgmr.msra.gmra.mrb[68].mxu0 %vm1270_vm6, %v1562_v18 }
 0x2c5   :  { %5344 = vmatpush1.bf16.msra.mxu1 %v6441_v47  ;;  %5404 = vmatpush3.bf16.msra.mxu0 %v6429_v21 }
 0x2c6   :  { %5346 = vmatprep.subr.bf16.mxu1 %v6459_v17  ;;  %5406 = vmatprep.subr.bf16.mxu0 %v6558_v32 }
 0x2c9   :  { %5348 = vmatpush1.bf16.msra.mxu1 %v6455_v13  ;;  %5408 = vmatpush3.bf16.msra.mxu0 %v6443_v48 }
 0x2ca   :  { %5350 = vmatprep.subr.bf16.mxu1 %v6473_v49  ;;  %5410 = vmatprep.subr.bf16.mxu0 %v6574_v22 }
 0x2cd   :  { %5352 = vmatpush1.bf16.msra.mxu1 %v6469_v43  ;;  %5412 = vmatpush3.bf16.msra.mxu0 %v6457_v14 }
 0x2ce   :  { %5354 = vmatprep.subr.bf16.mxu1 %v6487_v19  ;;  %5414 = vmatprep.subr.bf16.mxu0 %v6590_v11 }
 0x2d1   :  { %5356 = vmatpush1.bf16.msra.mxu1 %v6483_v12  ;;  %5416 = vmatpush3.bf16.msra.mxu0 %v6471_v44 }
 0x2d2   :  { %5358 = vmatprep.subr.bf16.mxu1 %v6501_v57  ;;  %5418 = vmatprep.subr.bf16.mxu0 %v6606_v16 }
 0x2d5   :  { %5360 = vmatpush1.bf16.msra.mxu1 %v6496_v50  ;;  %5420 = vmatpush3.bf16.msra.mxu0 %v6485_v15 }
 0x2d6   :  { %5362 = vmatprep.subr.bf16.mxu1 %v6515_v30  ;;  %5422 = vmatprep.subr.bf16.mxu0 %v6622_v59 }
 0x2d9   :  { %5364 = vmatpush1.bf16.msra.mxu1 %v6511_v26  ;;  %5424 = vmatpush3.bf16.msra.mxu0 %v6498_v54 }
 0x2da   :  { %5366 = vmatprep.subr.bf16.mxu1 %v6532_v6  ;;  %5426 = vmatprep.subr.bf16.mxu0 %v6638_v38 }
 0x2dd   :  { %5368 = vmatpush1.bf16.msra.mxu1 %v6528_v1  ;;  %5428 = vmatpush3.bf16.msra.mxu0 %v6513_v27 }
 0x2de   :  { %5370 = vmatprep.subr.bf16.mxu1 %v6546_v56  ;;  %5430 = vmatprep.subr.bf16.mxu0 %v6658_v5 }
 0x2e1   :  { %5372 = vmatpush1.bf16.msra.mxu1 %v6542_v42  ;;  %5432 = vmatpush3.bf16.msra.mxu0 %v6530_v2 }
 0x2e2   :  { %5374 = vmatprep.subr.bf16.mxu1 %v6562_v36  ;;  %5093 = vmatprep.subr.mxu0 %v7375_v61 }
 0x2e5   :  { %5376 = vmatpush1.bf16.msra.mxu1 %v6560_v33 }
 0x2e6   :  { %5378 = vmatprep.subr.bf16.mxu1 %v6578_v29 }
 0x2e9   :  { %5380 = vmatpush1.bf16.msra.mxu1 %v6576_v25 }
 0x2ea   :  { %5382 = vmatprep.subr.bf16.mxu1 %v7378_v51 }
 0x2ed   :  { %5384 = vmatpush1.bf16.msra.mxu1 %v7379_v46 }
 0x2ee   :  { %5386 = vmatprep.subr.bf16.mxu1 %v7380_v34 }
 0x2f1   :  { %5388 = vmatpush1.bf16.msra.mxu1 %v7381_v10 }
 0x2f2   :  { %5390 = vmatprep.subr.bf16.mxu1 %v7382_v28 }
 0x2f5   :  { %5392 = vmatpush1.bf16.msra.mxu1 %v7383_v41 }
 0x2f6   :  { %5394 = vmatprep.subr.bf16.mxu1 %v7384_v40 }
 0x2f9   :  { %5396 = vmatpush1.bf16.msra.mxu1 %v7385_v62 }
 0x2fa   :  { %5398 = vmatprep.subr.bf16.mxu1 %v6660_v23 }
 0x2fd   :  { %5400 = vmatpush1.bf16.msra.mxu1 %v6656_v3 }
 0x2fe   :  { %4496 = vmatprep.subr.msk.mxu1 %vm1273_vm5, %v6667_v4 }
 0x38f   :  { %v4642_v37 = vpop.f32.mrb[70].mxu1 }
 0x390   :  { %v4643_v58 = vpop.f32.mrb[71].mxu1 }
 0x391   :  { %v4644_v63 = vadd.f32 %v4643_v58, %v4642_v37 }
 0x393   :  { %v1846_v55 = vpop.f32.mrb[72].mxu1 }
 0x394   :  { %v1847_v60 = vadd.f32 %v4644_v63, %v1846_v55  ;;  %v5092_v8 = vpop.f32.mrb[73].mxu1 }
 0x397   :  { %v1705_v39 = vpop.f32.mrb[68].mxu0 }
 0x398   :  { %v1707_v0 = vpop.f32.mrb[69].mxu0 }
 0x399   :  { %1917 = vmatprep.mubr.f32.mxu1 %v1707_v0  ;;  %2059 = vmatprep.mubr.f32.mxu0 %v1707_v0 }
 0x39a   :  { %1918 = vmatmul.mubr.f32.vlgmr.msra.gmra.mrb[74].mxu1 %v1705_v39  ;;  %2060 = vmatmul.mubr.f32.vlgmr.msra.gmra.mrb[70].mxu0 %v1705_v39 }
 0x39b   :  { %4497 = vmatpush1.msk.msra.mxu1 %vm1273_vm5, %v6673_v52  ;;  %5094 = vmatpush3.msk.msra.mxu0 %vm1273_vm5, %v6669_v9 }
 0x39c   :  { %5434 = vmatprep.subr.bf16.mxu0 %v6431_v24  ;;  %5498 = vmatprep.subr.bf16.mxu1 %v6544_v45 }
 0x39d   :  { %5095 = vmatprep.mubr.msk.f32.mxu0 %vm6177_vm0, %v7375_v61  ;;  %1988 = vmatprep.mubr.f32.mxu1 %v7375_v61 }
 0x39e   :  { %5096 = vmatmul.mubr.msk.f32.vlgmr.msra.gmra.mrb[72].mxu0 %vm1270_vm6, %v1847_v60 }
 0x39f   :  { %5436 = vmatpush1.bf16.msra.mxu0 %v6427_v20 }
 0x3a0   :  { %5438 = vmatprep.subr.bf16.mxu0 %v6445_v53 }
 0x3a2   :  { %4498 = vmatmul.mubr.msk.f32.vlgmr.msra.gmra.mrb[74].mxu1 %vm1270_vm6, %v1847_v60 }
 0x3a3   :  { %5440 = vmatpush1.bf16.msra.mxu0 %v6441_v47  ;;  %5500 = vmatpush3.bf16.msra.mxu1 %v6429_v21 }
 0x3a4   :  { %5442 = vmatprep.subr.bf16.mxu0 %v6459_v17  ;;  %5502 = vmatprep.subr.bf16.mxu1 %v6558_v32 }
 0x3a7   :  { %5444 = vmatpush1.bf16.msra.mxu0 %v6455_v13  ;;  %5504 = vmatpush3.bf16.msra.mxu1 %v6443_v48 }
 0x3a8   :  { %5446 = vmatprep.subr.bf16.mxu0 %v6473_v49  ;;  %5506 = vmatprep.subr.bf16.mxu1 %v6574_v22 }
 0x3ab   :  { %5448 = vmatpush1.bf16.msra.mxu0 %v6469_v43  ;;  %5508 = vmatpush3.bf16.msra.mxu1 %v6457_v14 }
 0x3ac   :  { %5450 = vmatprep.subr.bf16.mxu0 %v6487_v19  ;;  %5510 = vmatprep.subr.bf16.mxu1 %v6590_v11 }
 0x3af   :  { %5452 = vmatpush1.bf16.msra.mxu0 %v6483_v12  ;;  %5512 = vmatpush3.bf16.msra.mxu1 %v6471_v44 }
 0x3b0   :  { %5454 = vmatprep.subr.bf16.mxu0 %v6501_v57  ;;  %5514 = vmatprep.subr.bf16.mxu1 %v6606_v16 }
 0x3b3   :  { %5456 = vmatpush1.bf16.msra.mxu0 %v6496_v50  ;;  %5516 = vmatpush3.bf16.msra.mxu1 %v6485_v15 }
 0x3b4   :  { %5458 = vmatprep.subr.bf16.mxu0 %v6515_v30  ;;  %5518 = vmatprep.subr.bf16.mxu1 %v6622_v59 }
 0x3b7   :  { %5460 = vmatpush1.bf16.msra.mxu0 %v6511_v26  ;;  %5520 = vmatpush3.bf16.msra.mxu1 %v6498_v54 }
 0x3b8   :  { %5462 = vmatprep.subr.bf16.mxu0 %v6532_v6  ;;  %5522 = vmatprep.subr.bf16.mxu1 %v6638_v38 }
 0x3bb   :  { %5464 = vmatpush1.bf16.msra.mxu0 %v6528_v1  ;;  %5524 = vmatpush3.bf16.msra.mxu1 %v6513_v27 }
 0x3bc   :  { %5466 = vmatprep.subr.bf16.mxu0 %v6546_v56  ;;  %5526 = vmatprep.subr.bf16.mxu1 %v6658_v5 }
 0x3bf   :  { %5468 = vmatpush1.bf16.msra.mxu0 %v6542_v42  ;;  %5528 = vmatpush3.bf16.msra.mxu1 %v6530_v2 }
 0x3c0   :  { %5470 = vmatprep.subr.bf16.mxu0 %v6562_v36  ;;  %5098 = vmatprep.subr.mxu1 %v7375_v61 }
 0x3c3   :  { %5472 = vmatpush1.bf16.msra.mxu0 %v6560_v33 }
 0x3c4   :  { %5474 = vmatprep.subr.bf16.mxu0 %v6578_v29 }
 0x3c7   :  { %5476 = vmatpush1.bf16.msra.mxu0 %v6576_v25 }
 0x3c8   :  { %5478 = vmatprep.subr.bf16.mxu0 %v7378_v51 }
 0x3cb   :  { %5480 = vmatpush1.bf16.msra.mxu0 %v7379_v46 }
 0x3cc   :  { %5482 = vmatprep.subr.bf16.mxu0 %v7380_v34 }
 0x3cf   :  { %5484 = vmatpush1.bf16.msra.mxu0 %v7381_v10 }
 0x3d0   :  { %5486 = vmatprep.subr.bf16.mxu0 %v7382_v28 }
 0x3d3   :  { %5488 = vmatpush1.bf16.msra.mxu0 %v7383_v41 }
 0x3d4   :  { %5490 = vmatprep.subr.bf16.mxu0 %v7384_v40 }
 0x3d7   :  { %5492 = vmatpush1.bf16.msra.mxu0 %v7385_v62 }
 0x3d8   :  { %5494 = vmatprep.subr.bf16.mxu0 %v6660_v23 }
 0x3db   :  { %5496 = vmatpush1.bf16.msra.mxu0 %v6656_v3 }
 0x3dc   :  { %4501 = vmatprep.subr.msk.mxu0 %vm1273_vm5, %v6667_v4 }
 0x46d   :  { %v4679_v18 = vpop.f32.mrb[70].mxu0 }
 0x46e   :  { %v4680_v7 = vpop.f32.mrb[71].mxu0 }
 0x46f   :  { %v4681_v31 = vadd.f32 %v4680_v7, %v4679_v18 }
 0x471   :  { %v2131_v35 = vpop.f32.mrb[72].mxu0 }
 0x472   :  { %v2132_v37 = vadd.f32 %v4681_v31, %v2131_v35  ;;  %v5097_v58 = vpop.f32.mrb[73].mxu0 }
 0x475   :  { %v1990_v63 = vpop.f32.mrb[74].mxu1 }
 0x476   :  { %v1992_v55 = vpop.f32.mrb[75].mxu1 }
 0x477   :  { %2202 = vmatprep.mubr.f32.mxu0 %v1992_v55  ;;  %2344 = vmatprep.mubr.f32.mxu1 %v1992_v55 }
 0x478   :  { %2203 = vmatmul.mubr.f32.vlgmr.msra.gmra.mrb[74].mxu0 %v1990_v63  ;;  %2345 = vmatmul.mubr.f32.vlgmr.msra.gmra.mrb[76].mxu1 %v1990_v63 }
 0x479   :  { %4502 = vmatpush1.msk.msra.mxu0 %vm1273_vm5, %v6673_v52  ;;  %5099 = vmatpush3.msk.msra.mxu1 %vm1273_vm5, %v6669_v9 }
 0x47a   :  { %5530 = vmatprep.subr.bf16.mxu1 %v6431_v24  ;;  %5594 = vmatprep.subr.bf16.mxu0 %v6544_v45 }
 0x47b   :  { %5100 = vmatprep.mubr.msk.f32.mxu1 %vm6177_vm0, %v7375_v61  ;;  %2273 = vmatprep.mubr.f32.mxu0 %v7375_v61 }
 0x47c   :  { %5101 = vmatmul.mubr.msk.f32.vlgmr.msra.gmra.mrb[78].mxu1 %vm1270_vm6, %v2132_v37 }
 0x47d   :  { %5532 = vmatpush1.bf16.msra.mxu1 %v6427_v20 }
 0x47e   :  { %5534 = vmatprep.subr.bf16.mxu1 %v6445_v53 }
 0x480   :  { %4503 = vmatmul.mubr.msk.f32.vlgmr.msra.gmra.mrb[74].mxu0 %vm1270_vm6, %v2132_v37 }
 0x481   :  { %5536 = vmatpush1.bf16.msra.mxu1 %v6441_v47  ;;  %5596 = vmatpush3.bf16.msra.mxu0 %v6429_v21 }
 0x482   :  { %5538 = vmatprep.subr.bf16.mxu1 %v6459_v17  ;;  %5598 = vmatprep.subr.bf16.mxu0 %v6558_v32 }
 0x485   :  { %5540 = vmatpush1.bf16.msra.mxu1 %v6455_v13  ;;  %5600 = vmatpush3.bf16.msra.mxu0 %v6443_v48 }
 0x486   :  { %5542 = vmatprep.subr.bf16.mxu1 %v6473_v49  ;;  %5602 = vmatprep.subr.bf16.mxu0 %v6574_v22 }
 0x489   :  { %5544 = vmatpush1.bf16.msra.mxu1 %v6469_v43  ;;  %5604 = vmatpush3.bf16.msra.mxu0 %v6457_v14 }
 0x48a   :  { %5546 = vmatprep.subr.bf16.mxu1 %v6487_v19  ;;  %5606 = vmatprep.subr.bf16.mxu0 %v6590_v11 }
 0x48d   :  { %5548 = vmatpush1.bf16.msra.mxu1 %v6483_v12  ;;  %5608 = vmatpush3.bf16.msra.mxu0 %v6471_v44 }
 0x48e   :  { %5550 = vmatprep.subr.bf16.mxu1 %v6501_v57  ;;  %5610 = vmatprep.subr.bf16.mxu0 %v6606_v16 }
 0x491   :  { %5552 = vmatpush1.bf16.msra.mxu1 %v6496_v50  ;;  %5612 = vmatpush3.bf16.msra.mxu0 %v6485_v15 }
 0x492   :  { %5554 = vmatprep.subr.bf16.mxu1 %v6515_v30  ;;  %5614 = vmatprep.subr.bf16.mxu0 %v6622_v59 }
 0x495   :  { %5556 = vmatpush1.bf16.msra.mxu1 %v6511_v26  ;;  %5616 = vmatpush3.bf16.msra.mxu0 %v6498_v54 }
 0x496   :  { %5558 = vmatprep.subr.bf16.mxu1 %v6532_v6  ;;  %5618 = vmatprep.subr.bf16.mxu0 %v6638_v38 }
 0x499   :  { %5560 = vmatpush1.bf16.msra.mxu1 %v6528_v1  ;;  %5620 = vmatpush3.bf16.msra.mxu0 %v6513_v27 }
 0x49a   :  { %5562 = vmatprep.subr.bf16.mxu1 %v6546_v56  ;;  %5622 = vmatprep.subr.bf16.mxu0 %v6658_v5 }
 0x49d   :  { %5564 = vmatpush1.bf16.msra.mxu1 %v6542_v42  ;;  %5624 = vmatpush3.bf16.msra.mxu0 %v6530_v2 }
 0x49e   :  { %5566 = vmatprep.subr.bf16.mxu1 %v6562_v36  ;;  %5103 = vmatprep.subr.mxu0 %v7375_v61 }
 0x4a1   :  { %5568 = vmatpush1.bf16.msra.mxu1 %v6560_v33 }
 0x4a2   :  { %5570 = vmatprep.subr.bf16.mxu1 %v6578_v29 }
 0x4a5   :  { %5572 = vmatpush1.bf16.msra.mxu1 %v6576_v25 }
 0x4a6   :  { %5574 = vmatprep.subr.bf16.mxu1 %v7378_v51 }
 0x4a9   :  { %5576 = vmatpush1.bf16.msra.mxu1 %v7379_v46 }
 0x4aa   :  { %5578 = vmatprep.subr.bf16.mxu1 %v7380_v34 }
 0x4ad   :  { %5580 = vmatpush1.bf16.msra.mxu1 %v7381_v10 }
 0x4ae   :  { %5582 = vmatprep.subr.bf16.mxu1 %v7382_v28 }
 0x4b1   :  { %5584 = vmatpush1.bf16.msra.mxu1 %v7383_v41 }
 0x4b2   :  { %5586 = vmatprep.subr.bf16.mxu1 %v7384_v40 }
 0x4b5   :  { %5588 = vmatpush1.bf16.msra.mxu1 %v7385_v62 }
 0x4b6   :  { %5590 = vmatprep.subr.bf16.mxu1 %v6660_v23 }
 0x4b9   :  { %5592 = vmatpush1.bf16.msra.mxu1 %v6656_v3 }
 0x4ba   :  { %4506 = vmatprep.subr.msk.mxu1 %vm1273_vm5, %v6667_v4 }
 0x54b   :  { %v4716_v60 = vpop.f32.mrb[76].mxu1 }
 0x54c   :  { %v4717_v8 = vpop.f32.mrb[77].mxu1 }
 0x54d   :  { %v4718_v39 = vadd.f32 %v4717_v8, %v4716_v60 }
 0x54f   :  { %v2416_v0 = vpop.f32.mrb[78].mxu1 }
 0x550   :  { %v2417_v18 = vadd.f32 %v4718_v39, %v2416_v0  ;;  %v5102_v7 = vpop.f32.mrb[79].mxu1 }
 0x553   :  { %v2275_v31 = vpop.f32.mrb[74].mxu0 }
 0x554   :  { %v2277_v35 = vpop.f32.mrb[75].mxu0 }
 0x555   :  { %2487 = vmatprep.mubr.f32.mxu1 %v2277_v35  ;;  %2629 = vmatprep.mubr.f32.mxu0 %v2277_v35 }
 0x556   :  { %2488 = vmatmul.mubr.f32.vlgmr.msra.gmra.mrb[80].mxu1 %v2275_v31  ;;  %2630 = vmatmul.mubr.f32.vlgmr.msra.gmra.mrb[76].mxu0 %v2275_v31 }
 0x557   :  { %4507 = vmatpush1.msk.msra.mxu1 %vm1273_vm5, %v6673_v52  ;;  %5104 = vmatpush3.msk.msra.mxu0 %vm1273_vm5, %v6669_v9 }
 0x558   :  { %5626 = vmatprep.subr.bf16.mxu0 %v6431_v24  ;;  %5690 = vmatprep.subr.bf16.mxu1 %v6544_v45 }
 0x559   :  { %5105 = vmatprep.mubr.msk.f32.mxu0 %vm6177_vm0, %v7375_v61  ;;  %2558 = vmatprep.mubr.f32.mxu1 %v7375_v61 }
 0x55a   :  { %5106 = vmatmul.mubr.msk.f32.vlgmr.msra.gmra.mrb[78].mxu0 %vm1270_vm6, %v2417_v18 }
 0x55b   :  { %5628 = vmatpush1.bf16.msra.mxu0 %v6427_v20 }
 0x55c   :  { %5630 = vmatprep.subr.bf16.mxu0 %v6445_v53 }
 0x55e   :  { %4508 = vmatmul.mubr.msk.f32.vlgmr.msra.gmra.mrb[80].mxu1 %vm1270_vm6, %v2417_v18 }
 0x55f   :  { %5632 = vmatpush1.bf16.msra.mxu0 %v6441_v47  ;;  %5692 = vmatpush3.bf16.msra.mxu1 %v6429_v21 }
 0x560   :  { %5634 = vmatprep.subr.bf16.mxu0 %v6459_v17  ;;  %5694 = vmatprep.subr.bf16.mxu1 %v6558_v32 }
 0x563   :  { %5636 = vmatpush1.bf16.msra.mxu0 %v6455_v13  ;;  %5696 = vmatpush3.bf16.msra.mxu1 %v6443_v48 }
 0x564   :  { %5638 = vmatprep.subr.bf16.mxu0 %v6473_v49  ;;  %5698 = vmatprep.subr.bf16.mxu1 %v6574_v22 }
 0x567   :  { %5640 = vmatpush1.bf16.msra.mxu0 %v6469_v43  ;;  %5700 = vmatpush3.bf16.msra.mxu1 %v6457_v14 }
 0x568   :  { %5642 = vmatprep.subr.bf16.mxu0 %v6487_v19  ;;  %5702 = vmatprep.subr.bf16.mxu1 %v6590_v11 }
 0x56b   :  { %5644 = vmatpush1.bf16.msra.mxu0 %v6483_v12  ;;  %5704 = vmatpush3.bf16.msra.mxu1 %v6471_v44 }
 0x56c   :  { %5646 = vmatprep.subr.bf16.mxu0 %v6501_v57  ;;  %5706 = vmatprep.subr.bf16.mxu1 %v6606_v16 }
 0x56f   :  { %5648 = vmatpush1.bf16.msra.mxu0 %v6496_v50  ;;  %5708 = vmatpush3.bf16.msra.mxu1 %v6485_v15 }
 0x570   :  { %5650 = vmatprep.subr.bf16.mxu0 %v6515_v30  ;;  %5710 = vmatprep.subr.bf16.mxu1 %v6622_v59 }
 0x573   :  { %5652 = vmatpush1.bf16.msra.mxu0 %v6511_v26  ;;  %5712 = vmatpush3.bf16.msra.mxu1 %v6498_v54 }
 0x574   :  { %5654 = vmatprep.subr.bf16.mxu0 %v6532_v6  ;;  %5714 = vmatprep.subr.bf16.mxu1 %v6638_v38 }
 0x577   :  { %5656 = vmatpush1.bf16.msra.mxu0 %v6528_v1  ;;  %5716 = vmatpush3.bf16.msra.mxu1 %v6513_v27 }
 0x578   :  { %5658 = vmatprep.subr.bf16.mxu0 %v6546_v56  ;;  %5718 = vmatprep.subr.bf16.mxu1 %v6658_v5 }
 0x57b   :  { %5660 = vmatpush1.bf16.msra.mxu0 %v6542_v42  ;;  %5720 = vmatpush3.bf16.msra.mxu1 %v6530_v2 }
 0x57c   :  { %5662 = vmatprep.subr.bf16.mxu0 %v6562_v36  ;;  %5108 = vmatprep.subr.mxu1 %v7375_v61 }
 0x57f   :  { %5664 = vmatpush1.bf16.msra.mxu0 %v6560_v33 }
 0x580   :  { %5666 = vmatprep.subr.bf16.mxu0 %v6578_v29 }
 0x583   :  { %5668 = vmatpush1.bf16.msra.mxu0 %v6576_v25 }
 0x584   :  { %5670 = vmatprep.subr.bf16.mxu0 %v7378_v51 }
 0x587   :  { %5672 = vmatpush1.bf16.msra.mxu0 %v7379_v46 }
 0x588   :  { %5674 = vmatprep.subr.bf16.mxu0 %v7380_v34 }
 0x58b   :  { %5676 = vmatpush1.bf16.msra.mxu0 %v7381_v10 }
 0x58c   :  { %5678 = vmatprep.subr.bf16.mxu0 %v7382_v28 }
 0x58f   :  { %5680 = vmatpush1.bf16.msra.mxu0 %v7383_v41 }
 0x590   :  { %5682 = vmatprep.subr.bf16.mxu0 %v7384_v40 }
 0x593   :  { %5684 = vmatpush1.bf16.msra.mxu0 %v7385_v62 }
 0x594   :  { %5686 = vmatprep.subr.bf16.mxu0 %v6660_v23 }
 0x597   :  { %5688 = vmatpush1.bf16.msra.mxu0 %v6656_v3 }
 0x598   :  { %4511 = vmatprep.subr.msk.mxu0 %vm1273_vm5, %v6667_v4 }
 0x629   :  { %v4753_v37 = vpop.f32.mrb[76].mxu0 }
 0x62a   :  { %v4754_v58 = vpop.f32.mrb[77].mxu0 }
 0x62b   :  { %v4755_v63 = vadd.f32 %v4754_v58, %v4753_v37 }
 0x62d   :  { %v2701_v55 = vpop.f32.mrb[78].mxu0 }
 0x62e   :  { %v2702_v60 = vadd.f32 %v4755_v63, %v2701_v55  ;;  %v5107_v8 = vpop.f32.mrb[79].mxu0 }
 0x631   :  { %v2560_v39 = vpop.f32.mrb[80].mxu1 }
 0x632   :  { %v2562_v0 = vpop.f32.mrb[81].mxu1 }
 0x633   :  { %2772 = vmatprep.mubr.f32.mxu0 %v2562_v0  ;;  %2914 = vmatprep.mubr.f32.mxu1 %v2562_v0 }
 0x634   :  { %2773 = vmatmul.mubr.f32.vlgmr.msra.gmra.mrb[80].mxu0 %v2560_v39  ;;  %2915 = vmatmul.mubr.f32.vlgmr.msra.gmra.mrb[82].mxu1 %v2560_v39 }
 0x635   :  { %4512 = vmatpush1.msk.msra.mxu0 %vm1273_vm5, %v6673_v52  ;;  %5109 = vmatpush3.msk.msra.mxu1 %vm1273_vm5, %v6669_v9 }
 0x636   :  { %5722 = vmatprep.subr.bf16.mxu1 %v6431_v24  ;;  %5786 = vmatprep.subr.bf16.mxu0 %v6544_v45 }
 0x637   :  { %5110 = vmatprep.mubr.msk.f32.mxu1 %vm6177_vm0, %v7375_v61  ;;  %2843 = vmatprep.mubr.f32.mxu0 %v7375_v61 }
 0x638   :  { %5111 = vmatmul.mubr.msk.f32.vlgmr.msra.gmra.mrb[84].mxu1 %vm1270_vm6, %v2702_v60 }
 0x639   :  { %5724 = vmatpush1.bf16.msra.mxu1 %v6427_v20 }
 0x63a   :  { %5726 = vmatprep.subr.bf16.mxu1 %v6445_v53 }
 0x63c   :  { %4513 = vmatmul.mubr.msk.f32.vlgmr.msra.gmra.mrb[80].mxu0 %vm1270_vm6, %v2702_v60 }
 0x63d   :  { %5728 = vmatpush1.bf16.msra.mxu1 %v6441_v47  ;;  %5788 = vmatpush3.bf16.msra.mxu0 %v6429_v21 }
 0x63e   :  { %5730 = vmatprep.subr.bf16.mxu1 %v6459_v17  ;;  %5790 = vmatprep.subr.bf16.mxu0 %v6558_v32 }
 0x641   :  { %5732 = vmatpush1.bf16.msra.mxu1 %v6455_v13  ;;  %5792 = vmatpush3.bf16.msra.mxu0 %v6443_v48 }
 0x642   :  { %5734 = vmatprep.subr.bf16.mxu1 %v6473_v49  ;;  %5794 = vmatprep.subr.bf16.mxu0 %v6574_v22 }
 0x645   :  { %5736 = vmatpush1.bf16.msra.mxu1 %v6469_v43  ;;  %5796 = vmatpush3.bf16.msra.mxu0 %v6457_v14 }
 0x646   :  { %5738 = vmatprep.subr.bf16.mxu1 %v6487_v19  ;;  %5798 = vmatprep.subr.bf16.mxu0 %v6590_v11 }
 0x649   :  { %5740 = vmatpush1.bf16.msra.mxu1 %v6483_v12  ;;  %5800 = vmatpush3.bf16.msra.mxu0 %v6471_v44 }
 0x64a   :  { %5742 = vmatprep.subr.bf16.mxu1 %v6501_v57  ;;  %5802 = vmatprep.subr.bf16.mxu0 %v6606_v16 }
 0x64d   :  { %5744 = vmatpush1.bf16.msra.mxu1 %v6496_v50  ;;  %5804 = vmatpush3.bf16.msra.mxu0 %v6485_v15 }
 0x64e   :  { %5746 = vmatprep.subr.bf16.mxu1 %v6515_v30  ;;  %5806 = vmatprep.subr.bf16.mxu0 %v6622_v59 }
 0x651   :  { %5748 = vmatpush1.bf16.msra.mxu1 %v6511_v26  ;;  %5808 = vmatpush3.bf16.msra.mxu0 %v6498_v54 }
 0x652   :  { %5750 = vmatprep.subr.bf16.mxu1 %v6532_v6  ;;  %5810 = vmatprep.subr.bf16.mxu0 %v6638_v38 }
 0x655   :  { %5752 = vmatpush1.bf16.msra.mxu1 %v6528_v1  ;;  %5812 = vmatpush3.bf16.msra.mxu0 %v6513_v27 }
 0x656   :  { %5754 = vmatprep.subr.bf16.mxu1 %v6546_v56  ;;  %5814 = vmatprep.subr.bf16.mxu0 %v6658_v5 }
 0x659   :  { %5756 = vmatpush1.bf16.msra.mxu1 %v6542_v42  ;;  %5816 = vmatpush3.bf16.msra.mxu0 %v6530_v2 }
 0x65a   :  { %5758 = vmatprep.subr.bf16.mxu1 %v6562_v36  ;;  %5113 = vmatprep.subr.mxu0 %v7375_v61 }
 0x65d   :  { %5760 = vmatpush1.bf16.msra.mxu1 %v6560_v33 }
 0x65e   :  { %5762 = vmatprep.subr.bf16.mxu1 %v6578_v29 }
 0x661   :  { %5764 = vmatpush1.bf16.msra.mxu1 %v6576_v25 }
 0x662   :  { %5766 = vmatprep.subr.bf16.mxu1 %v7378_v51 }
 0x665   :  { %5768 = vmatpush1.bf16.msra.mxu1 %v7379_v46 }
 0x666   :  { %5770 = vmatprep.subr.bf16.mxu1 %v7380_v34 }
 0x669   :  { %5772 = vmatpush1.bf16.msra.mxu1 %v7381_v10 }
 0x66a   :  { %5774 = vmatprep.subr.bf16.mxu1 %v7382_v28 }
 0x66d   :  { %5776 = vmatpush1.bf16.msra.mxu1 %v7383_v41 }
 0x66e   :  { %5778 = vmatprep.subr.bf16.mxu1 %v7384_v40 }
 0x671   :  { %5780 = vmatpush1.bf16.msra.mxu1 %v7385_v62 }
 0x672   :  { %5782 = vmatprep.subr.bf16.mxu1 %v6660_v23 }
 0x675   :  { %5784 = vmatpush1.bf16.msra.mxu1 %v6656_v3 }
 0x676   :  { %4516 = vmatprep.subr.msk.mxu1 %vm1273_vm5, %v6667_v4 }
 0x707   :  { %v4790_v18 = vpop.f32.mrb[82].mxu1 }
 0x708   :  { %v4791_v7 = vpop.f32.mrb[83].mxu1 }
 0x709   :  { %v4792_v31 = vadd.f32 %v4791_v7, %v4790_v18 }
 0x70b   :  { %v2986_v35 = vpop.f32.mrb[84].mxu1 }
 0x70c   :  { %v2987_v37 = vadd.f32 %v4792_v31, %v2986_v35  ;;  %v5112_v58 = vpop.f32.mrb[85].mxu1 }
 0x70f   :  { %v2845_v63 = vpop.f32.mrb[80].mxu0 }
 0x710   :  { %v2847_v55 = vpop.f32.mrb[81].mxu0 }
 0x711   :  { %3057 = vmatprep.mubr.f32.mxu1 %v2847_v55  ;;  %3199 = vmatprep.mubr.f32.mxu0 %v2847_v55 }
 0x712   :  { %3058 = vmatmul.mubr.f32.vlgmr.msra.gmra.mrb[86].mxu1 %v2845_v63  ;;  %3200 = vmatmul.mubr.f32.vlgmr.msra.gmra.mrb[82].mxu0 %v2845_v63 }
 0x713   :  { %4517 = vmatpush1.msk.msra.mxu1 %vm1273_vm5, %v6673_v52  ;;  %5114 = vmatpush3.msk.msra.mxu0 %vm1273_vm5, %v6669_v9 }
 0x714   :  { %5818 = vmatprep.subr.bf16.mxu0 %v6431_v24  ;;  %5882 = vmatprep.subr.bf16.mxu1 %v6544_v45 }
 0x715   :  { %5115 = vmatprep.mubr.msk.f32.mxu0 %vm6177_vm0, %v7375_v61  ;;  %3128 = vmatprep.mubr.f32.mxu1 %v7375_v61 }
 0x716   :  { %5116 = vmatmul.mubr.msk.f32.vlgmr.msra.gmra.mrb[84].mxu0 %vm1270_vm6, %v2987_v37 }
 0x717   :  { %5820 = vmatpush1.bf16.msra.mxu0 %v6427_v20 }
 0x718   :  { %5822 = vmatprep.subr.bf16.mxu0 %v6445_v53 }
 0x71a   :  { %4518 = vmatmul.mubr.msk.f32.vlgmr.msra.gmra.mrb[86].mxu1 %vm1270_vm6, %v2987_v37 }
 0x71b   :  { %5824 = vmatpush1.bf16.msra.mxu0 %v6441_v47  ;;  %5884 = vmatpush3.bf16.msra.mxu1 %v6429_v21 }
 0x71c   :  { %5826 = vmatprep.subr.bf16.mxu0 %v6459_v17  ;;  %5886 = vmatprep.subr.bf16.mxu1 %v6558_v32 }
 0x71f   :  { %5828 = vmatpush1.bf16.msra.mxu0 %v6455_v13  ;;  %5888 = vmatpush3.bf16.msra.mxu1 %v6443_v48 }
 0x720   :  { %5830 = vmatprep.subr.bf16.mxu0 %v6473_v49  ;;  %5890 = vmatprep.subr.bf16.mxu1 %v6574_v22 }
 0x723   :  { %5832 = vmatpush1.bf16.msra.mxu0 %v6469_v43  ;;  %5892 = vmatpush3.bf16.msra.mxu1 %v6457_v14 }
 0x724   :  { %5834 = vmatprep.subr.bf16.mxu0 %v6487_v19  ;;  %5894 = vmatprep.subr.bf16.mxu1 %v6590_v11 }
 0x727   :  { %5836 = vmatpush1.bf16.msra.mxu0 %v6483_v12  ;;  %5896 = vmatpush3.bf16.msra.mxu1 %v6471_v44 }
 0x728   :  { %5838 = vmatprep.subr.bf16.mxu0 %v6501_v57  ;;  %5898 = vmatprep.subr.bf16.mxu1 %v6606_v16 }
 0x72b   :  { %5840 = vmatpush1.bf16.msra.mxu0 %v6496_v50  ;;  %5900 = vmatpush3.bf16.msra.mxu1 %v6485_v15 }
 0x72c   :  { %5842 = vmatprep.subr.bf16.mxu0 %v6515_v30  ;;  %5902 = vmatprep.subr.bf16.mxu1 %v6622_v59 }
 0x72f   :  { %5844 = vmatpush1.bf16.msra.mxu0 %v6511_v26  ;;  %5904 = vmatpush3.bf16.msra.mxu1 %v6498_v54 }
 0x730   :  { %5846 = vmatprep.subr.bf16.mxu0 %v6532_v6  ;;  %5906 = vmatprep.subr.bf16.mxu1 %v6638_v38 }
 0x733   :  { %5848 = vmatpush1.bf16.msra.mxu0 %v6528_v1  ;;  %5908 = vmatpush3.bf16.msra.mxu1 %v6513_v27 }
 0x734   :  { %5850 = vmatprep.subr.bf16.mxu0 %v6546_v56  ;;  %5910 = vmatprep.subr.bf16.mxu1 %v6658_v5 }
 0x737   :  { %5852 = vmatpush1.bf16.msra.mxu0 %v6542_v42  ;;  %5912 = vmatpush3.bf16.msra.mxu1 %v6530_v2 }
 0x738   :  { %5854 = vmatprep.subr.bf16.mxu0 %v6562_v36  ;;  %5118 = vmatprep.subr.mxu1 %v7375_v61 }
 0x73b   :  { %5856 = vmatpush1.bf16.msra.mxu0 %v6560_v33 }
 0x73c   :  { %5858 = vmatprep.subr.bf16.mxu0 %v6578_v29 }
 0x73f   :  { %5860 = vmatpush1.bf16.msra.mxu0 %v6576_v25 }
 0x740   :  { %5862 = vmatprep.subr.bf16.mxu0 %v7378_v51 }
 0x743   :  { %5864 = vmatpush1.bf16.msra.mxu0 %v7379_v46 }
 0x744   :  { %5866 = vmatprep.subr.bf16.mxu0 %v7380_v34 }
 0x747   :  { %5868 = vmatpush1.bf16.msra.mxu0 %v7381_v10 }
 0x748   :  { %5870 = vmatprep.subr.bf16.mxu0 %v7382_v28 }
 0x74b   :  { %5872 = vmatpush1.bf16.msra.mxu0 %v7383_v41 }
 0x74c   :  { %5874 = vmatprep.subr.bf16.mxu0 %v7384_v40 }
 0x74f   :  { %5876 = vmatpush1.bf16.msra.mxu0 %v7385_v62 }
 0x750   :  { %5878 = vmatprep.subr.bf16.mxu0 %v6660_v23 }
 0x753   :  { %5880 = vmatpush1.bf16.msra.mxu0 %v6656_v3 }
 0x754   :  { %4521 = vmatprep.subr.msk.mxu0 %vm1273_vm5, %v6667_v4 }
 0x7e5   :  { %v4827_v60 = vpop.f32.mrb[82].mxu0 }
 0x7e6   :  { %v4828_v8 = vpop.f32.mrb[83].mxu0 }
 0x7e7   :  { %v4829_v39 = vadd.f32 %v4828_v8, %v4827_v60 }
 0x7e9   :  { %v3271_v0 = vpop.f32.mrb[84].mxu0 }
 0x7ea   :  { %v3272_v18 = vadd.f32 %v4829_v39, %v3271_v0  ;;  %v5117_v7 = vpop.f32.mrb[85].mxu0 }
 0x7ed   :  { %v3130_v31 = vpop.f32.mrb[86].mxu1 }
 0x7ee   :  { %v3132_v35 = vpop.f32.mrb[87].mxu1 }
 0x7ef   :  { %3342 = vmatprep.mubr.f32.mxu0 %v3132_v35  ;;  %3484 = vmatprep.mubr.f32.mxu1 %v3132_v35  ;;  %v4145_v35 = vld [vmem:[%s7345_s3 + $0x78] sm:$0xff] }
 0x7f0   :  { %3343 = vmatmul.mubr.f32.vlgmr.msra.gmra.mrb[86].mxu0 %v3130_v31  ;;  %3485 = vmatmul.mubr.f32.vlgmr.msra.gmra.mrb[88].mxu1 %v3130_v31  ;;  %v4144_v31 = vld [vmem:[%s7345_s3 + $0x70] sm:$0xff] }
 0x7f1   :  { %4522 = vmatpush1.msk.msra.mxu0 %vm1273_vm5, %v6673_v52  ;;  %5119 = vmatpush3.msk.msra.mxu1 %vm1273_vm5, %v6669_v9 }
 0x7f2   :  { %5914 = vmatprep.subr.bf16.mxu1 %v6431_v24  ;;  %5978 = vmatprep.subr.bf16.mxu0 %v6544_v45 }
 0x7f3   :  { %5120 = vmatprep.mubr.msk.f32.mxu1 %vm6177_vm0, %v7375_v61  ;;  %3413 = vmatprep.mubr.f32.mxu0 %v7375_v61 }
 0x7f4   :  { %5121 = vmatmul.mubr.msk.f32.vlgmr.msra.gmra.mrb[90].mxu1 %vm1270_vm6, %v3272_v18 }
 0x7f5   :  { %5916 = vmatpush1.bf16.msra.mxu1 %v6427_v20 }
 0x7f6   :  { %5918 = vmatprep.subr.bf16.mxu1 %v6445_v53 }
 0x7f8   :  { %4523 = vmatmul.mubr.msk.f32.vlgmr.msra.gmra.mrb[86].mxu0 %vm1270_vm6, %v3272_v18  ;;  %v4161_v18 = vld [vmem:[%s7345_s3 + $0xf8] sm:$0xff] }
 0x7f9   :  { %5920 = vmatpush1.bf16.msra.mxu1 %v6441_v47  ;;  %5980 = vmatpush3.bf16.msra.mxu0 %v6429_v21 }
 0x7fa   :  { %5922 = vmatprep.subr.bf16.mxu1 %v6459_v17  ;;  %5982 = vmatprep.subr.bf16.mxu0 %v6558_v32 }
 0x7fd   :  { %5924 = vmatpush1.bf16.msra.mxu1 %v6455_v13  ;;  %5984 = vmatpush3.bf16.msra.mxu0 %v6443_v48 }
 0x7fe   :  { %5926 = vmatprep.subr.bf16.mxu1 %v6473_v49  ;;  %5986 = vmatprep.subr.bf16.mxu0 %v6574_v22 }
 0x801   :  { %5928 = vmatpush1.bf16.msra.mxu1 %v6469_v43  ;;  %5988 = vmatpush3.bf16.msra.mxu0 %v6457_v14 }
 0x802   :  { %5930 = vmatprep.subr.bf16.mxu1 %v6487_v19  ;;  %5990 = vmatprep.subr.bf16.mxu0 %v6590_v11 }
 0x805   :  { %5932 = vmatpush1.bf16.msra.mxu1 %v6483_v12  ;;  %5992 = vmatpush3.bf16.msra.mxu0 %v6471_v44 }
 0x806   :  { %5934 = vmatprep.subr.bf16.mxu1 %v6501_v57  ;;  %5994 = vmatprep.subr.bf16.mxu0 %v6606_v16 }
 0x809   :  { %5936 = vmatpush1.bf16.msra.mxu1 %v6496_v50  ;;  %5996 = vmatpush3.bf16.msra.mxu0 %v6485_v15 }
 0x80a   :  { %5938 = vmatprep.subr.bf16.mxu1 %v6515_v30  ;;  %5998 = vmatprep.subr.bf16.mxu0 %v6622_v59 }
 0x80d   :  { %5940 = vmatpush1.bf16.msra.mxu1 %v6511_v26  ;;  %6000 = vmatpush3.bf16.msra.mxu0 %v6498_v54 }
 0x80e   :  { %5942 = vmatprep.subr.bf16.mxu1 %v6532_v6  ;;  %6002 = vmatprep.subr.bf16.mxu0 %v6638_v38 }
 0x811   :  { %5944 = vmatpush1.bf16.msra.mxu1 %v6528_v1  ;;  %6004 = vmatpush3.bf16.msra.mxu0 %v6513_v27 }
 0x812   :  { %5946 = vmatprep.subr.bf16.mxu1 %v6546_v56  ;;  %6006 = vmatprep.subr.bf16.mxu0 %v6658_v5 }
 0x815   :  { %5948 = vmatpush1.bf16.msra.mxu1 %v6542_v42  ;;  %6008 = vmatpush3.bf16.msra.mxu0 %v6530_v2 }
 0x816   :  { %5950 = vmatprep.subr.bf16.mxu1 %v6562_v36  ;;  %5123 = vmatprep.subr.mxu0 %v7375_v61 }
 0x819   :  { %5952 = vmatpush1.bf16.msra.mxu1 %v6560_v33 }
 0x81a   :  { %5954 = vmatprep.subr.bf16.mxu1 %v6578_v29 }
 0x81d   :  { %5956 = vmatpush1.bf16.msra.mxu1 %v6576_v25 }
 0x81e   :  { %5958 = vmatprep.subr.bf16.mxu1 %v7378_v51 }
 0x821   :  { %5960 = vmatpush1.bf16.msra.mxu1 %v7379_v46 }
 0x822   :  { %5962 = vmatprep.subr.bf16.mxu1 %v7380_v34 }
 0x825   :  { %5964 = vmatpush1.bf16.msra.mxu1 %v7381_v10 }
 0x826   :  { %5966 = vmatprep.subr.bf16.mxu1 %v7382_v28 }
 0x829   :  { %5968 = vmatpush1.bf16.msra.mxu1 %v7383_v41 }
 0x82a   :  { %5970 = vmatprep.subr.bf16.mxu1 %v7384_v40 }
 0x82d   :  { %5972 = vmatpush1.bf16.msra.mxu1 %v7385_v62 }
 0x82e   :  { %5974 = vmatprep.subr.bf16.mxu1 %v6660_v23 }
 0x831   :  { %5976 = vmatpush1.bf16.msra.mxu1 %v6656_v3 }
 0x832   :  { %4526 = vmatprep.subr.msk.mxu1 %vm1273_vm5, %v6667_v4 }
 0x8c3   :  { %v4864_v37 = vpop.f32.mrb[88].mxu1 }
 0x8c4   :  { %v4865_v58 = vpop.f32.mrb[89].mxu1 }
 0x8c5   :  { %v4866_v63 = vadd.f32 %v4865_v58, %v4864_v37  ;;  %v6135_v37 = vpack.c.bf16 %v4145_v35, %v4144_v31 }
 0x8c7   :  { %v3556_v55 = vpop.f32.mrb[90].mxu1 }
 0x8c8   :  { %v3557_v60 = vadd.f32 %v4866_v63, %v3556_v55  ;;  %v5122_v8 = vpop.f32.mrb[91].mxu1 }
 0x8cb   :  { %v3415_v39 = vpop.f32.mrb[86].mxu0 }
 0x8cc   :  { %v3417_v0 = vpop.f32.mrb[87].mxu0 }
 0x8cd   :  { %3627 = vmatprep.mubr.f32.mxu1 %v3417_v0  ;;  %3769 = vmatprep.mubr.f32.mxu0 %v3417_v0 }
 0x8ce   :  { %3628 = vmatmul.mubr.f32.vlgmr.msra.gmra.mrb[92].mxu1 %v3415_v39  ;;  %3770 = vmatmul.mubr.f32.vlgmr.msra.gmra.mrb[88].mxu0 %v3415_v39 }
 0x8cf   :  { %4527 = vmatpush1.msk.msra.mxu1 %vm1273_vm5, %v6673_v52  ;;  %5124 = vmatpush3.msk.msra.mxu0 %vm1273_vm5, %v6669_v9 }
 0x8d0   :  { %6010 = vmatprep.subr.bf16.mxu0 %v6431_v24  ;;  %6074 = vmatprep.subr.bf16.mxu1 %v6544_v45  ;;  %v4152_v45 = vld [vmem:[%s7345_s3 + $0xb0] sm:$0xff] }
 0x8d1   :  { %5125 = vmatprep.mubr.msk.f32.mxu0 %vm6177_vm0, %v7375_v61  ;;  %3698 = vmatprep.mubr.f32.mxu1 %v7375_v61 }
 0x8d2   :  { %5126 = vmatmul.mubr.msk.f32.vlgmr.msra.gmra.mrb[90].mxu0 %vm1270_vm6, %v3557_v60 }
 0x8d3   :  { %6012 = vmatpush1.bf16.msra.mxu0 %v6427_v20 }
 0x8d4   :  { %6014 = vmatprep.subr.bf16.mxu0 %v6445_v53 }
 0x8d6   :  { %4528 = vmatmul.mubr.msk.f32.vlgmr.msra.gmra.mrb[92].mxu1 %vm1270_vm6, %v3557_v60 }
 0x8d7   :  { %6016 = vmatpush1.bf16.msra.mxu0 %v6441_v47  ;;  %6076 = vmatpush3.bf16.msra.mxu1 %v6429_v21 }
 0x8d8   :  { %6018 = vmatprep.subr.bf16.mxu0 %v6459_v17  ;;  %6078 = vmatprep.subr.bf16.mxu1 %v6558_v32 }
 0x8db   :  { %6020 = vmatpush1.bf16.msra.mxu0 %v6455_v13  ;;  %6080 = vmatpush3.bf16.msra.mxu1 %v6443_v48  ;;  %v4146_v13 = vld [vmem:[%s7345_s3 + $0x80] sm:$0xff] }
 0x8dc   :  { %6022 = vmatprep.subr.bf16.mxu0 %v6473_v49  ;;  %6082 = vmatprep.subr.bf16.mxu1 %v6574_v22  ;;  %v4131_v49 = vld [vmem:[%s7345_s3 + $0x8] sm:$0xff]  ;;  %v4137_v22 = vld [vmem:[%s7345_s3 + $0x38] sm:$0xff] }
 0x8df   :  { %6024 = vmatpush1.bf16.msra.mxu0 %v6469_v43  ;;  %6084 = vmatpush3.bf16.msra.mxu1 %v6457_v14  ;;  %v4147_v14 = vld [vmem:[%s7345_s3 + $0x88] sm:$0xff] }
 0x8e0   :  { %6026 = vmatprep.subr.bf16.mxu0 %v6487_v19  ;;  %6086 = vmatprep.subr.bf16.mxu1 %v6590_v11  ;;  %v4149_v19 = vld [vmem:[%s7345_s3 + $0x98] sm:$0xff] }
 0x8e3   :  { %6028 = vmatpush1.bf16.msra.mxu0 %v6483_v12  ;;  %6088 = vmatpush3.bf16.msra.mxu1 %v6471_v44  ;;  %v4130_v44 = vld [vmem:[%s7345_s3] sm:$0xff]  ;;  %v6105_v12 = vpack.c.bf16 %v4147_v14, %v4146_v13 }
 0x8e4   :  { %6030 = vmatprep.subr.bf16.mxu0 %v6501_v57  ;;  %6090 = vmatprep.subr.bf16.mxu1 %v6606_v16  ;;  %v4132_v57 = vld [vmem:[%s7345_s3 + $0x10] sm:$0xff] }
 0x8e7   :  { %6032 = vmatpush1.bf16.msra.mxu0 %v6496_v50  ;;  %6092 = vmatpush3.bf16.msra.mxu1 %v6485_v15  ;;  %v4148_v15 = vld [vmem:[%s7345_s3 + $0x90] sm:$0xff]  ;;  %v6107_v50 = vpack.c.bf16 %v4131_v49, %v4130_v44 }
 0x8e8   :  { %6034 = vmatprep.subr.bf16.mxu0 %v6515_v30  ;;  %6094 = vmatprep.subr.bf16.mxu1 %v6622_v59  ;;  %v4151_v30 = vld [vmem:[%s7345_s3 + $0xa8] sm:$0xff] }
 0x8e9   :  { %v4139_v59 = vld [vmem:[%s7345_s3 + $0x48] sm:$0xff] }
 0x8eb   :  { %6036 = vmatpush1.bf16.msra.mxu0 %v6511_v26  ;;  %6096 = vmatpush3.bf16.msra.mxu1 %v6498_v54  ;;  %v6109_v54 = vpack.c.bf16 %v4149_v19, %v4148_v15  ;;  %v4133_v26 = vld [vmem:[%s7345_s3 + $0x18] sm:$0xff] }
 0x8ec   :  { %6038 = vmatprep.subr.bf16.mxu0 %v6532_v6  ;;  %6098 = vmatprep.subr.bf16.mxu1 %v6638_v38  ;;  %v4134_v6 = vld [vmem:[%s7345_s3 + $0x20] sm:$0xff] }
 0x8ed   :  { %v4138_v38 = vld [vmem:[%s7345_s3 + $0x40] sm:$0xff] }
 0x8ef   :  { %6040 = vmatpush1.bf16.msra.mxu0 %v6528_v1  ;;  %6100 = vmatpush3.bf16.msra.mxu1 %v6513_v27  ;;  %v4150_v27 = vld [vmem:[%s7345_s3 + $0xa0] sm:$0xff]  ;;  %v6111_v1 = vpack.c.bf16 %v4133_v26, %v4132_v57 }
 0x8f0   :  { %6042 = vmatprep.subr.bf16.mxu0 %v6546_v56  ;;  %6102 = vmatprep.subr.bf16.mxu1 %v6658_v5  ;;  %v4153_v56 = vld [vmem:[%s7345_s3 + $0xb8] sm:$0xff]  ;;  %v6123_v5 = vpack.c.bf16 %v4139_v59, %v4138_v38 }
 0x8f3   :  { %6044 = vmatpush1.bf16.msra.mxu0 %v6542_v42  ;;  %6104 = vmatpush3.bf16.msra.mxu1 %v6530_v2  ;;  %v6113_v2 = vpack.c.bf16 %v4151_v30, %v4150_v27  ;;  %v4135_v42 = vld [vmem:[%s7345_s3 + $0x28] sm:$0xff] }
 0x8f4   :  { %6046 = vmatprep.subr.bf16.mxu0 %v6562_v36  ;;  %5128 = vmatprep.subr.mxu1 %v7375_v61  ;;  %v6115_v32 = vpack.c.bf16 %v4135_v42, %v4134_v6  ;;  %v4136_v36 = vld [vmem:[%s7345_s3 + $0x30] sm:$0xff] }
 0x8f5   :  { %v6119_v11 = vpack.c.bf16 %v4137_v22, %v4136_v36 }
 0x8f7   :  { %6048 = vmatpush1.bf16.msra.mxu0 %v6560_v33  ;;  %v6117_v33 = vpack.c.bf16 %v4153_v56, %v4152_v45 }
 0x8f8   :  { %6050 = vmatprep.subr.bf16.mxu0 %v6578_v29  ;;  %v4155_v29 = vld [vmem:[%s7345_s3 + $0xc8] sm:$0xff] }
 0x8fb   :  { %6052 = vmatpush1.bf16.msra.mxu0 %v6576_v25  ;;  %v4154_v25 = vld [vmem:[%s7345_s3 + $0xc0] sm:$0xff] }
 0x8fc   :  { %6054 = vmatprep.subr.bf16.mxu0 %v7378_v51  ;;  %v6121_v16 = vpack.c.bf16 %v4155_v29, %v4154_v25  ;;  %v4158_v51 = vld [vmem:[%s7345_s3 + $0xe0] sm:$0xff] }
 0x8ff   :  { %6056 = vmatpush1.bf16.msra.mxu0 %v7379_v46  ;;  %v4159_v46 = vld [vmem:[%s7345_s3 + $0xe8] sm:$0xff] }
 0x900   :  { %6058 = vmatprep.subr.bf16.mxu0 %v7380_v34  ;;  %v6129_v34 = vpack.c.bf16 %v4159_v46, %v4158_v51 }
 0x903   :  { %6060 = vmatpush1.bf16.msra.mxu0 %v7381_v10  ;;  %v4142_v10 = vld [vmem:[%s7345_s3 + $0x60] sm:$0xff] }
 0x904   :  { %6062 = vmatprep.subr.bf16.mxu0 %v7382_v28  ;;  %v4143_v28 = vld [vmem:[%s7345_s3 + $0x68] sm:$0xff] }
 0x907   :  { %6064 = vmatpush1.bf16.msra.mxu0 %v7383_v41  ;;  %v6131_v41 = vpack.c.bf16 %v4143_v28, %v4142_v10 }
 0x908   :  { %6066 = vmatprep.subr.bf16.mxu0 %v7384_v40  ;;  %v4162_v40 = vld [vmem:[%s7345_s3 + $0x100] sm:$0x7] }
 0x90b   :  { %6068 = vmatpush1.bf16.msra.mxu0 %v7385_v62  ;;  %v4160_v62 = vld [vmem:[%s7345_s3 + $0xf0] sm:$0xff] }
 0x90c   :  { %6070 = vmatprep.subr.bf16.mxu0 %v6660_v23  ;;  %v6133_v7 = vpack.c.bf16 %v4161_v18, %v4160_v62 }
 0x90f   :  { %6072 = vmatpush1.bf16.msra.mxu0 %v6656_v3  ;;  %v4157_v3 = vld [vmem:[%s7345_s3 + $0xd8] sm:$0xff] }
 0x910   :  { %4531 = vmatprep.subr.msk.mxu0 %vm1273_vm5, %v6667_v4  ;;  %v4140_v4 = vld [vmem:[%s7345_s3 + $0x50] sm:$0xff] }
 0x9a1   :  { %v4901_v20 = vpop.f32.mrb[88].mxu0 }
 0x9a2   :  { %v4902_v21 = vpop.f32.mrb[89].mxu0 }
 0x9a3   :  { %v4903_v24 = vadd.f32 %v4902_v21, %v4901_v20  ;;  %v4309_v21 = vld [vmem:[%s7346_s4] sm:$0x1] }
 0x9a5   :  { %v3841_v47 = vpop.f32.mrb[90].mxu0 }
 0x9a6   :  { %v3842_v48 = vadd.f32 %v4903_v24, %v3841_v47  ;;  %v5127_v53 = vpop.f32.mrb[91].mxu0  ;;  %v4336_v24 = vand.u32 2147483647, %v4309_v21 }
 0x9a8   :  { %6168 = vrcp.f32 %v4336_v24 }
 0x9a9   :  { %v3700_v17 = vpop.f32.mrb[92].mxu1 }
 0x9aa   :  { %v3702_v43 = vpop.f32.mrb[93].mxu1 }
 0x9ab   :  { %3912 = vmatprep.mubr.f32.mxu0 %v3702_v43  ;;  %4054 = vmatprep.mubr.f32.mxu1 %v3702_v43 }
 0x9ac   :  { %3913 = vmatmul.mubr.f32.vlgmr.msra.gmra.mrb[92].mxu0 %v3700_v17  ;;  %4055 = vmatmul.mubr.f32.vlgmr.msra.gmra.mrb[94].mxu1 %v3700_v17 }
 0x9ad   :  { %4532 = vmatpush1.msk.msra.mxu0 %vm1273_vm5, %v6673_v52  ;;  %5129 = vmatpush3.msk.msra.mxu1 %vm1273_vm5, %v6669_v9  ;;  %v4141_v9 = vld [vmem:[%s7345_s3 + $0x58] sm:$0xff] }
 0x9ae   :  { %5130 = vmatprep.mubr.msk.f32.mxu1 %vm6177_vm0, %v7375_v61  ;;  %3983 = vmatprep.mubr.f32.mxu0 %v7375_v61  ;;  %v6127_v52 = vpack.c.bf16 %v4141_v9, %v4140_v4 }
 0x9af   :  { %6106 = vmatprep.subr.bf16.mxu1 %v6105_v12  ;;  %5133 = vmatprep.subr.mxu0 %v7375_v61 }
 0x9b0   :  { %5131 = vmatmul.mubr.msk.f32.vlgmr.msra.gmra.mrb[96].mxu1 %vm1270_vm6, %v3842_v48 }
 0x9b1   :  { %6108 = vmatpush3.bf16.msra.mxu1 %v6107_v50 }
 0x9b2   :  { %6110 = vmatprep.subr.bf16.mxu1 %v6109_v54  ;;  %v6169_v49 = vpop.eup %6168 }
 0x9b4   :  { %4533 = vmatmul.mubr.msk.f32.vlgmr.msra.gmra.mrb[92].mxu0 %vm1270_vm6, %v3842_v48 }
 0x9b5   :  { %6112 = vmatpush3.bf16.msra.mxu1 %v6111_v1  ;;  %5135 = vmatprep.mubr.msk.f32.mxu0 %vm6177_vm0, %v7375_v61  ;;  %v4156_v61 = vld [vmem:[%s7345_s3 + $0xd0] sm:$0xff]  ;;  %vm4313_vm0 = vcmask 57344  }
 0x9b6   :  { %6114 = vmatprep.subr.bf16.mxu1 %v6113_v2  ;;  %v6125_v23 = vpack.c.bf16 %v4157_v3, %v4156_v61  ;;  %5134 = vmatpush3.msk.msra.mxu0 %vm1273_vm5, %v4162_v40 }
 0x9b9   :  { %6116 = vmatpush3.bf16.msra.mxu1 %v6115_v32 }
 0x9ba   :  { %6118 = vmatprep.subr.bf16.mxu1 %v6117_v33 }
 0x9bd   :  { %6120 = vmatpush3.bf16.msra.mxu1 %v6119_v11 }
 0x9be   :  { %6122 = vmatprep.subr.bf16.mxu1 %v6121_v16 }
 0x9c1   :  { %6124 = vmatpush3.bf16.msra.mxu1 %v6123_v5 }
 0x9c2   :  { %6126 = vmatprep.subr.bf16.mxu1 %v6125_v23 }
 0x9c5   :  { %6128 = vmatpush3.bf16.msra.mxu1 %v6127_v52 }
 0x9c6   :  { %6130 = vmatprep.subr.bf16.mxu1 %v6129_v34 }
 0x9c9   :  { %6132 = vmatpush3.bf16.msra.mxu1 %v6131_v41  ;;  %v7386_v41 = vld [vmem:[#allocation2_spill] sm:$0xff] }
 0x9ca   :  { %6134 = vmatprep.subr.bf16.mxu1 %v6133_v7  ;;  %vm4373_vm9 = vcmp.eq.s32.totalorder %v7386_v41, 3  ;;  %vm4372_vm10 = vcmp.eq.s32.totalorder %v7386_v41, 2  ;;  %vm4371_vm11 = vcmp.eq.s32.totalorder %v7386_v41, 1  ;;  %vm4370_vm12 = vcmp.eq.s32.totalorder %v7386_v41, 0 }
 0x9cd   :  { %6136 = vmatpush3.bf16.msra.mxu1 %v6135_v37 }
 0xa7f   :  { %v4938_v58 = vpop.f32.mrb[94].mxu1 }
 0xa80   :  { %v4939_v63 = vpop.f32.mrb[95].mxu1 }
 0xa81   :  { %v4940_v55 = vadd.f32 %v4939_v63, %v4938_v58 }
 0xa83   :  { %v4126_v60 = vpop.f32.mrb[96].mxu1 }
 0xa84   :  { %v4127_v8 = vadd.f32 %v4940_v55, %v4126_v60  ;;  %v5132_v39 = vpop.f32.mrb[97].mxu1 }
 0xa86   :  { %5136 = vmatmul.mubr.msk.f32.vlgmr.msra.gmra.mrb[94].mxu0 %vm1270_vm6, %v4127_v8 }
 0xa87   :  { %v3985_v0 = vpop.f32.mrb[92].mxu0 }
 0xa88   :  { %v3987_v20 = vpop.f32.mrb[93].mxu0 }
 0xa89   :  { %4233 = vmatprep.mubr.f32.mxu1 %v3987_v20 }
 0xa8a   :  { %4234 = vmatmul.mubr.f32.vlgmr.msra.gmra.mrb[98].mxu1 %v3985_v0 }
 0xb59   :  { %v4305_v47 = vpop.f32.mrb[94].mxu0 }
 0xb5a   :  { %v5137_v48 = vpop.f32.mrb[95].mxu0 }
 0xb5d   :  { %v4975_v53 = vpop.f32.mrb[98].mxu1 }
 0xb5e   :  { %v4976_v13 = vpop.f32.mrb[99].mxu1 }
 0xb5f   :  { %v4977_v14 = vadd.f32 %v4976_v13, %v4975_v53 }
 0xb61   :  { %v4306_v17 = vadd.f32 %v4977_v14, %v4305_v47 }
 0xb63   :  { %v4353_v43 = vand.u32 2147483647, %v4306_v17  ;;  %v4310_v44 = vsub.f32 %v4306_v17, %v4309_v21 }
 0xb65   :  { %v4312_v12 = vmul.f32 %v4310_v44, %v4310_v44  ;;  %v4354_v15 = vadd.f32 %v4353_v43, %v4336_v24  ;;  %v4311_v19 = vand.u32 2147483647, %v4310_v44 }
 0xb67   :  { %v4314_v50 = vsel %vm4313_vm0, %v4312_v12, 0.0  ;;  %6170 = vrcp.f32 %v4354_v15  ;;  %v4338_v54 = vmul.f32 %v6169_v49, %v4311_v19  ;;  %v4352_v26 = vmul.f32 2.0, %v4311_v19 }
 0xb68   :  { %4315 = vadd.xlane.f32.xlu1 %v4314_v50 }
 0xb69   :  { %v4339_v57 = vsel %vm4313_vm0, %v4338_v54, 0.0 }
 0xb6a   :  { %4340 = vadd.xlane.f32.xlu0 %v4339_v57 }
 0xb71   :  { %v6171_v27 = vpop.eup %6170 }
 0xb72   :  { %v4356_v30 = vmul.f32 %v6171_v27, %v4352_v26 }
 0xb74   :  { %v4357_v1 = vsel %vm4313_vm0, %v4356_v30, 0.0 }
 0xb75   :  { %4358 = vadd.xlane.f32.xlu1 %v4357_v1 }
 0xbf5   :  { %v4316_v2 = vpop.xlane.xlu1 %4315 }
 0xbf6   :  { %v4317_v6 = vrot.slane %v4316_v2, 4 }
 0xbf7   :  { %v4341_v36 = vpop.xlane.xlu0 %4340 }
 0xbf8   :  { %v4318_v42 = vadd.f32 %v4317_v6, %v4316_v2  ;;  %v4342_v25 = vrot.slane %v4341_v36, 4 }
 0xbfa   :  { %v4319_v45 = vrot.slane %v4318_v42, 2  ;;  %v4343_v11 = vadd.f32 %v4342_v25, %v4341_v36 }
 0xbfc   :  { %v4320_v56 = vadd.f32 %v4319_v45, %v4318_v42  ;;  %v4344_v59 = vrot.slane %v4343_v11, 2 }
 0xbfe   :  { %v4321_v32 = vrot.slane %v4320_v56, 1  ;;  %v4345_v3 = vadd.f32 %v4344_v59, %v4343_v11 }
 0xc00   :  { %v4322_v33 = vadd.f32 %v4321_v32, %v4320_v56  ;;  %v4346_v4 = vrot.slane %v4345_v3, 1 }
 0xc02   :  { %6157 = vpush %v4322_v33  ;;  %v4359_v22 = vpop.xlane.xlu1 %4358  ;;  %v4347_v10 = vadd.f32 %v4346_v4, %v4345_v3 }
 0xc03   :  { %v4360_v29 = vrot.slane %v4359_v22, 4 }
 0xc05   :  { %v4361_v16 = vadd.f32 %v4360_v29, %v4359_v22 }
 0xc07   :  { %v4362_v61 = vrot.slane %v4361_v16, 2 }
 0xc09   :  { %v4363_v5 = vadd.f32 %v4362_v61, %v4361_v16 }
 0xc0b   :  { %v4364_v52 = vrot.slane %v4363_v5, 1 }
 0xc0d   :  { %v4365_v28 = vadd.f32 %v4364_v52, %v4363_v5 }
 0xc33   :  { %s6158_s3 = spop %6157 }
 0xc34   :  { %s4326_s4 = smul.f32 0.125, %s6158_s3 }
 0xc36   :  { %v4327_v38 = vstv %s4326_s4 }
 0xc37   :  { %6172 = vrsqrt.f32 %v4327_v38  ;;  %vm4330_vm7 = vcmp.eq.f32.partialorder %v4327_v38, inf  ;;  %v4333_v51 = vand.u32 2147483648, %v4327_v38  ;;  %vm4332_vm8 = vcmp.eq.f32.partialorder %v4327_v38, 0.0 }
 0xc41   :  { %v6173_v23 = vpop.eup %6172 }
 0xc42   :  { %v4329_v9 = vmul.f32 %v6173_v23, %v4327_v38 }
 0xc44   :  { %v4331_v46 = vsel %vm4330_vm7, %v4327_v38, %v4329_v9 }
 0xc45   :  { %v4334_v34 = vsel %vm4332_vm8, %v4333_v51, %v4331_v46 }
 0xc46   :  { %6159 = vpush %v4334_v34 }
 0xc47   :  { %6161 = vpush %v4347_v10 }
 0xc48   :  { %6163 = vpush %v4365_v28 }
 0xc77   :  { %s6160_s30 = spop %6159 }
 0xc78   :  { %s6162_s6 = spop %6161  ;;  %v4378_v7 = vstv %s6160_s30 }
 0xc79   :  { %s4351_s7 = smul.f32 0.125, %s6162_s6  ;;  %s6164_s8 = spop %6163 }
 0xc7a   :  { %s4369_s9 = smul.f32 0.125, %s6164_s8 }
 0xc7b   :  { %v4376_v40 = vstv %s4351_s7 }
 0xc7c   :  { %v4374_v62 = vstv %s4369_s9 }
 0xc7d   :  { %v4375_v18 = vsel %vm4373_vm9, %v4374_v62, 0.0 }
 0xc7e   :  { %v4377_v31 = vsel %vm4372_vm10, %v4376_v40, %v4375_v18 }
 0xc7f   :  { %v4379_v35 = vsel %vm4371_vm11, %v4378_v7, %v4377_v31 }
 0xc80   :  { %v4381_v37 = vsel %vm4370_vm12, %v4327_v38, %v4379_v35 }
 0xc81   :  { %4382 = vst [vmem:[%s7347_s5] sm:$0xff] %v4381_v37 }

</bundles_post_ra>
